<compile_context>
chip_gen: v5e
topology: v5e:2x2
jax: 0.10.0
libtpu: 0.0.40
codegen_flags: <defaults>
</compile_context>

<pallas_src>
import functools

import jax
import jax.numpy as jnp
from jax.experimental import pallas as pl
from jax.experimental.pallas import tpu as pltpu


def _pli_head_kernel(feats_ref, mask_ref, drug_ref, wp_ref, wd_ref, b_ref,
                     out_ref, num_acc, den_acc):
    """One (TB, TL) tile of masked-mean-pool + Linear(Dp+Dd -> 1).

    feats_ref : (TB, TL, Dp)  token features tile (native dtype, e.g. bf16)
    mask_ref  : (TB, 1, TL)   1.0 valid / 0.0 padding
    drug_ref  : (TB, Dd)      drug model output
    wp_ref    : (1, Dp)       lane-dense Linear weight slice (protein part)
    wd_ref    : (1, Dd)       lane-dense Linear weight slice (drug part)
    b_ref     : (1, 1)        Linear bias
    out_ref   : (TB, 1)       predictions
    num_acc   : (TB, 1, Dp) f32  running masked sum of token features
    den_acc   : (TB, 1, 1)  f32  running sum of mask
    """
    l = pl.program_id(1)

    @pl.when(l == 0)
    def _init():
        num_acc[...] = jnp.zeros_like(num_acc)
        den_acc[...] = jnp.zeros_like(den_acc)

    feats = feats_ref[...]                         # (TB, TL, Dp) native dtype
    mask = mask_ref[...]                           # (TB, 1, TL)

    # Masked sequence-sum on the MXU: (TB,1,TL) @ (TB,TL,Dp) -> (TB,1,Dp),
    # f32 accumulation.  The streamed tile is consumed directly in its HBM
    # dtype; no whole-tile upcast, no XLU lane-reduce in the hot path.
    num_acc[...] += jnp.einsum(
        "bkt,btd->bkd", mask.astype(feats.dtype), feats,
        preferred_element_type=jnp.float32)
    den_acc[...] += jnp.sum(mask.astype(jnp.float32), axis=-1, keepdims=True)

    @pl.when(l == pl.num_programs(1) - 1)
    def _finalize():
        wp = wp_ref[...].astype(jnp.float32)       # (1, Dp)
        wd = wd_ref[...].astype(jnp.float32)       # (1, Dd)
        drug = drug_ref[...].astype(jnp.float32)   # (TB, Dd)
        # NOTE: matches PyTorch semantics — a fully padded row divides by 0.
        pooled = num_acc[...] / den_acc[...]                      # (TB, 1, Dp)
        pooled_term = jnp.sum(pooled * wp, axis=-1)               # (TB, 1)
        drug_term = jnp.sum(drug * wd, axis=-1, keepdims=True)    # (TB, 1)
        out_ref[...] = (pooled_term + drug_term + b_ref[...]).astype(out_ref.dtype)


def _vmem_budgets():
    """(per-buffer feats budget, vmem_limit_bytes), generation-aware."""
    cap = None
    try:
        cap = getattr(pltpu.get_tpu_info(), "vmem_capacity_bytes", None)
    except Exception:
        cap = None
    if cap is None:
        cap = 64 * 1024 * 1024                 # conservative (v7x-sized)
    if cap >= 100 * 1024 * 1024:               # 128 MiB parts (v5e / v6e)
        return 20 * 1024 * 1024, 64 * 1024 * 1024
    return 8 * 1024 * 1024, 32 * 1024 * 1024   # 64 MiB parts (v7x)


def _pick_tiles(B, Lp, Dp, itemsize, feats_buf_budget):
    """Tile sizes respecting the (8, 128) rule and a per-buffer VMEM budget."""
    TB = 8 if B % 8 == 0 else B
    # Largest TL (multiple of 128 dividing Lp) whose feats tile fits the budget.
    TL = 128
    cand = 256
    while cand <= Lp:
        if Lp % cand == 0 and TB * cand * Dp * itemsize <= feats_buf_budget:
            TL = cand
        cand += 128
    # Grow TB (multiples of 8) while the tile fits and >=2 batch tiles remain,
    # so the parallel axis keeps both v7x TensorCores fed and per-step DMAs
    # stay large enough to amortize the ~0.35us grid-step overhead.
    if B % 8 == 0:
        cand_tb = 2 * TB
        while (cand_tb * 2 <= B and B % cand_tb == 0
               and cand_tb * TL * Dp * itemsize <= feats_buf_budget):
            TB = cand_tb
            cand_tb *= 2
    return TB, TL


@functools.partial(jax.jit, static_argnames=("feats_buf_budget",))
def protein_bert_pli_forward(token_feats, mask, drug_output, w, b,
                             *, feats_buf_budget=None):
    """Masked-mean pooling + concat + Linear head of ProteinBertPLIModel.

    token_feats : (B, L, Dp) float32 / bfloat16 (streamed in native dtype)
    mask        : (B, L)     float (0/1)
    drug_output : (B, Dd)    float32
    w           : (1, Dp+Dd) float32   (torch nn.Linear weight layout)
    b           : (1,)       float32   (torch nn.Linear bias)
    returns     : (B, 1)     float32
    """
    B, L, Dp = token_feats.shape
    _, Dd = drug_output.shape
    assert w.shape == (1, Dp + Dd)
    assert mask.shape == (B, L)

    auto_budget, vmem_limit = _vmem_budgets()
    budget = auto_budget if feats_buf_budget is None else feats_buf_budget

    # Split the Linear weight into lane-dense (1, D) rows so the concat never
    # materializes: Linear(cat([pooled, drug])) == pooled.wp + drug.wd + b.
    wp = w[:, :Dp].astype(jnp.float32)               # (1, Dp)
    wd = w[:, Dp:].astype(jnp.float32)               # (1, Dd)
    b2 = b.reshape(1, 1).astype(jnp.float32)         # (1, 1)

    # Pad L up to a multiple of 128 (mask zeros keep the masked sums exact) so
    # the pipelined, budget-respecting tiling is used for any protein length.
    Lp = max(128, ((L + 127) // 128) * 128)
    if Lp != L:
        token_feats = jnp.pad(token_feats, ((0, 0), (0, Lp - L), (0, 0)))
        mask = jnp.pad(mask, ((0, 0), (0, Lp - L)))
    mask3 = mask[:, None, :]                          # (B, 1, Lp)

    itemsize = jnp.dtype(token_feats.dtype).itemsize
    TB, TL = _pick_tiles(B, Lp, Dp, itemsize, budget)
    grid = (B // TB, Lp // TL)

    bytes_accessed = (
        B * Lp * Dp * itemsize
        + B * Lp * jnp.dtype(mask.dtype).itemsize
        + B * Dd * jnp.dtype(drug_output.dtype).itemsize
        + (Dp + Dd + 1) * 4
        + B * 4
    )
    cost = pl.CostEstimate(
        flops=2 * B * Lp * Dp + 2 * B * (Dp + Dd) + 2 * B * Lp,
        transcendentals=0,
        bytes_accessed=bytes_accessed,
    )

    return pl.pallas_call(
        _pli_head_kernel,
        out_shape=jax.ShapeDtypeStruct((B, 1), jnp.float32),
        grid=grid,
        in_specs=[
            pl.BlockSpec((TB, TL, Dp), lambda bi, li: (bi, li, 0)),
            pl.BlockSpec((TB, 1, TL), lambda bi, li: (bi, 0, li)),
            pl.BlockSpec((TB, Dd), lambda bi, li: (bi, 0)),
            pl.BlockSpec((1, Dp), lambda bi, li: (0, 0)),
            pl.BlockSpec((1, Dd), lambda bi, li: (0, 0)),
            pl.BlockSpec((1, 1), lambda bi, li: (0, 0)),
        ],
        out_specs=pl.BlockSpec((TB, 1), lambda bi, li: (bi, 0)),
        scratch_shapes=[
            pltpu.VMEM((TB, 1, Dp), jnp.float32),   # masked-sum accumulator
            pltpu.VMEM((TB, 1, 1), jnp.float32),    # mask-count accumulator
        ],
        compiler_params=pltpu.CompilerParams(
            dimension_semantics=("parallel", "arbitrary"),
            vmem_limit_bytes=vmem_limit,
        ),
        cost_estimate=cost,
    )(token_feats, mask3, drug_output, wp, wd, b2)


def _reference(token_feats, mask, drug_output, w, b):
    """Pure-JAX reference matching the PyTorch forward semantics."""
    masked = token_feats.astype(jnp.float32) * mask[:, :, None]
    pooled = masked.sum(axis=1) / mask.sum(axis=1, keepdims=True)
    cat = jnp.concatenate([pooled, drug_output.astype(jnp.float32)], axis=1)
    return cat @ w.T + b


if __name__ == "__main__":
    # Small shapes consistent with the head's forward pass.
    B, L, Dp, Dd = 8, 512, 128, 128
    dim = Dp + Dd

    key = jax.random.PRNGKey(0)
    k_feats, k_drug, k_w, k_b = jax.random.split(key, 4)

    # Stand-ins for prot_bert(seq, mask)[0] (kept bf16: halves streamed bytes)
    # and drug_model(batch_drugs).
    token_feats = jax.random.normal(
        k_feats, (B, L, Dp), dtype=jnp.float32).astype(jnp.bfloat16)
    drug_output = jax.random.normal(k_drug, (B, Dd), dtype=jnp.float32)

    # Deterministic per-row valid lengths -> padding mask.
    lengths = jnp.array([L, 475, L, 64, 250, 128, 5, 32], dtype=jnp.int32)
    mask = (jnp.arange(L)[None, :] < lengths[:, None]).astype(jnp.float32)

    # Deterministic nn.Linear(dim, 1) parameters.
    w = jax.random.normal(k_w, (1, dim), dtype=jnp.float32) * 0.1
    b = jax.random.normal(k_b, (1,), dtype=jnp.float32) * 0.1

    ref = _reference(token_feats, mask, drug_output, w, b)

    # 1) Tiny feats budget -> multiple L tiles (exercises init / accumulate /
    #    finalize of the reduction grid).
    preds_multi = protein_bert_pli_forward(
        token_feats, mask, drug_output, w, b, feats_buf_budget=512 * 1024)
    preds_multi = jax.block_until_ready(preds_multi)
    assert preds_multi.shape == (B, 1)
    assert jnp.allclose(preds_multi, ref, atol=5e-3, rtol=5e-3), (preds_multi, ref)

    # 2) Auto (generation-aware) budget: single L tile for these small shapes.
    preds_auto = protein_bert_pli_forward(token_feats, mask, drug_output, w, b)
    preds_auto = jax.block_until_ready(preds_auto)
    assert preds_auto.shape == (B, 1)
    assert jnp.allclose(preds_auto, ref, atol=5e-3, rtol=5e-3), (preds_auto, ref)

    # 3) Ragged L (not a multiple of 128) exercises the padding path.
    L2 = 477
    tf2 = token_feats[:, :L2]
    mask2 = mask[:, :L2]
    ref2 = _reference(tf2, mask2, drug_output, w, b)
    preds_ragged = protein_bert_pli_forward(tf2, mask2, drug_output, w, b)
    preds_ragged = jax.block_until_ready(preds_ragged)
    assert preds_ragged.shape == (B, 1)
    assert jnp.allclose(preds_ragged, ref2, atol=5e-3, rtol=5e-3), (preds_ragged, ref2)

    print("KERNEL_OK")
</pallas_src>

<mosaic_0001>
module attributes {stable_mosaic.version = 11 : i64} {
  func.func @_pli_head_kernel(%arg0: i32, %arg1: i32, %arg2: memref<8x256x128xbf16, #tpu.memory_space<vmem>>, %arg3: memref<8x1x256xf32, #tpu.memory_space<vmem>>, %arg4: memref<8x128xf32, #tpu.memory_space<vmem>>, %arg5: memref<1x128xf32, #tpu.memory_space<vmem>>, %arg6: memref<1x128xf32, #tpu.memory_space<vmem>>, %arg7: memref<1x1xf32, #tpu.memory_space<vmem>>, %arg8: memref<8x1xf32, #tpu.memory_space<vmem>>, %arg9: memref<8x1x128xf32, #tpu.memory_space<vmem>>, %arg10: memref<8x1x1xf32, #tpu.memory_space<vmem>>) attributes {dimension_semantics = [#tpu.dimension_semantics<parallel>, #tpu.dimension_semantics<arbitrary>], iteration_bounds = array<i64: 1, 2>, scalar_prefetch = 0 : i64, scratch_operands = 2 : i64, tpu.core_type = #tpu.core_type<tc>, window_params = [{transform_indices = @transform_0, window_bounds = array<i64: 8, 256, 128>}, {transform_indices = @transform_1, window_bounds = array<i64: 8, 1, 256>}, {transform_indices = @transform_2, window_bounds = array<i64: 8, 128>}, {pipeline_mode = #tpu.pipeline_mode<synchronous>, transform_indices = @transform_3, window_bounds = array<i64: 1, 128>}, {pipeline_mode = #tpu.pipeline_mode<synchronous>, transform_indices = @transform_4, window_bounds = array<i64: 1, 128>}, {pipeline_mode = #tpu.pipeline_mode<synchronous>, transform_indices = @transform_5, window_bounds = array<i64: 1, 1>}, {transform_indices = @transform_6, window_bounds = array<i64: 8, 1>}]} {
    %c0_i32 = arith.constant 0 : i32
    %0 = arith.cmpi eq, %arg1, %c0_i32 : i32
    %1 = arith.extui %0 : i1 to i32
    %c0_i32_0 = arith.constant 0 : i32
    %2 = arith.cmpi ne, %1, %c0_i32_0 : i32
    scf.if %2 {
      %cst_20 = arith.constant 0.000000e+00 : f32
      %18 = vector.broadcast %cst_20 : f32 to vector<8x1x128xf32>
      %c0_21 = arith.constant 0 : index
      %c0_22 = arith.constant 0 : index
      %c0_23 = arith.constant 0 : index
      %19 = vector.load %arg9[%c0_21, %c0_22, %c0_23] : memref<8x1x128xf32, #tpu.memory_space<vmem>>, vector<8x1x128xf32>
      tpu.vector_store %arg9[%c0_21, %c0_22, %c0_23], %18 {strides = array<i32>} : memref<8x1x128xf32, #tpu.memory_space<vmem>>, vector<8x1x128xf32>,
      %cst_24 = arith.constant 0.000000e+00 : f32
      %20 = vector.broadcast %cst_24 : f32 to vector<8x1x1xf32>
      %c0_25 = arith.constant 0 : index
      %c0_26 = arith.constant 0 : index
      %c0_27 = arith.constant 0 : index
      %21 = vector.load %arg10[%c0_25, %c0_26, %c0_27] : memref<8x1x1xf32, #tpu.memory_space<vmem>>, vector<8x1x1xf32>
      tpu.vector_store %arg10[%c0_25, %c0_26, %c0_27], %20 {strides = array<i32>} : memref<8x1x1xf32, #tpu.memory_space<vmem>>, vector<8x1x1xf32>,
    } else {
    }
    %c0 = arith.constant 0 : index
    %c0_1 = arith.constant 0 : index
    %c0_2 = arith.constant 0 : index
    %3 = vector.load %arg2[%c0, %c0_1, %c0_2] : memref<8x256x128xbf16, #tpu.memory_space<vmem>>, vector<8x256x128xbf16>
    %c0_3 = arith.constant 0 : index
    %c0_4 = arith.constant 0 : index
    %c0_5 = arith.constant 0 : index
    %4 = vector.load %arg3[%c0_3, %c0_4, %c0_5] : memref<8x1x256xf32, #tpu.memory_space<vmem>>, vector<8x1x256xf32>
    %c0_6 = arith.constant 0 : index
    %c0_7 = arith.constant 0 : index
    %c0_8 = arith.constant 0 : index
    %5 = vector.load %arg9[%c0_6, %c0_7, %c0_8] : memref<8x1x128xf32, #tpu.memory_space<vmem>>, vector<8x1x128xf32>
    %6 = arith.truncf %4 : vector<8x1x256xf32> to vector<8x1x256xbf16>
    "tpu.trace_start"() <{level = 10 : i32, message = "bkt,btd->bkd"}> : () -> ()
    %cst = arith.constant dense<0.000000e+00> : vector<8x1x128xf32>
    %7 = tpu.matmul %6, %3, %cst {dimension_numbers = #tpu.dot_dimension_numbers<[2], [1], [1], [2], [0, 0, 0, 1, 1, 2], [0], [0]>} : vector<8x1x256xbf16>, vector<8x256x128xbf16>, vector<8x1x128xf32> -> vector<8x1x128xf32>
    "tpu.trace_stop"() : () -> ()
    %8 = arith.addf %5, %7 : vector<8x1x128xf32>
    %c0_9 = arith.constant 0 : index
    %c0_10 = arith.constant 0 : index
    %c0_11 = arith.constant 0 : index
    %9 = vector.load %arg9[%c0_9, %c0_10, %c0_11] : memref<8x1x128xf32, #tpu.memory_space<vmem>>, vector<8x1x128xf32>
    tpu.vector_store %arg9[%c0_9, %c0_10, %c0_11], %8 {strides = array<i32>} : memref<8x1x128xf32, #tpu.memory_space<vmem>>, vector<8x1x128xf32>,
    %c0_12 = arith.constant 0 : index
    %c0_13 = arith.constant 0 : index
    %c0_14 = arith.constant 0 : index
    %10 = vector.load %arg10[%c0_12, %c0_13, %c0_14] : memref<8x1x1xf32, #tpu.memory_space<vmem>>, vector<8x1x1xf32>
    %cst_15 = arith.constant dense<0.000000e+00> : vector<8x1xf32>
    %11 = vector.multi_reduction <add>, %4, %cst_15 [2] : vector<8x1x256xf32> to vector<8x1xf32>
    %12 = vector.shape_cast %11 : vector<8x1xf32> to vector<8x1x1xf32>
    %13 = arith.addf %10, %12 : vector<8x1x1xf32>
    %c0_16 = arith.constant 0 : index
    %c0_17 = arith.constant 0 : index
    %c0_18 = arith.constant 0 : index
    %14 = vector.load %arg10[%c0_16, %c0_17, %c0_18] : memref<8x1x1xf32, #tpu.memory_space<vmem>>, vector<8x1x1xf32>
    tpu.vector_store %arg10[%c0_16, %c0_17, %c0_18], %13 {strides = array<i32>} : memref<8x1x1xf32, #tpu.memory_space<vmem>>, vector<8x1x1xf32>,
    %c1_i32 = arith.constant 1 : i32
    %15 = arith.cmpi eq, %arg1, %c1_i32 : i32
    %16 = arith.extui %15 : i1 to i32
    %c0_i32_19 = arith.constant 0 : i32
    %17 = arith.cmpi ne, %16, %c0_i32_19 : i32
    scf.if %17 {
      %c0_20 = arith.constant 0 : index
      %c0_21 = arith.constant 0 : index
      %18 = vector.load %arg5[%c0_20, %c0_21] : memref<1x128xf32, #tpu.memory_space<vmem>>, vector<1x128xf32>
      %c0_22 = arith.constant 0 : index
      %c0_23 = arith.constant 0 : index
      %19 = vector.load %arg6[%c0_22, %c0_23] : memref<1x128xf32, #tpu.memory_space<vmem>>, vector<1x128xf32>
      %c0_24 = arith.constant 0 : index
      %c0_25 = arith.constant 0 : index
      %20 = vector.load %arg4[%c0_24, %c0_25] : memref<8x128xf32, #tpu.memory_space<vmem>>, vector<8x128xf32>
      %c0_26 = arith.constant 0 : index
      %c0_27 = arith.constant 0 : index
      %c0_28 = arith.constant 0 : index
      %21 = vector.load %arg9[%c0_26, %c0_27, %c0_28] : memref<8x1x128xf32, #tpu.memory_space<vmem>>, vector<8x1x128xf32>
      %c0_29 = arith.constant 0 : index
      %c0_30 = arith.constant 0 : index
      %c0_31 = arith.constant 0 : index
      %22 = vector.load %arg10[%c0_29, %c0_30, %c0_31] : memref<8x1x1xf32, #tpu.memory_space<vmem>>, vector<8x1x1xf32>
      %23 = vector.broadcast %22 : vector<8x1x1xf32> to vector<8x1x128xf32>
      %24 = arith.divf %21, %23 : vector<8x1x128xf32>
      %25 = vector.shape_cast %18 : vector<1x128xf32> to vector<1x1x128xf32>
      %26 = vector.broadcast %25 : vector<1x1x128xf32> to vector<8x1x128xf32>
      %27 = arith.mulf %24, %26 : vector<8x1x128xf32>
      %cst_32 = arith.constant dense<0.000000e+00> : vector<8x1xf32>
      %28 = vector.multi_reduction <add>, %27, %cst_32 [2] : vector<8x1x128xf32> to vector<8x1xf32>
      %29 = vector.broadcast %19 : vector<1x128xf32> to vector<8x128xf32>
      %30 = arith.mulf %20, %29 : vector<8x128xf32>
      %cst_33 = arith.constant dense<0.000000e+00> : vector<8xf32>
      %31 = vector.multi_reduction <add>, %30, %cst_33 [1] : vector<8x128xf32> to vector<8xf32>
      %32 = vector.shape_cast %31 : vector<8xf32> to vector<8x1xf32>
      %33 = arith.addf %28, %32 : vector<8x1xf32>
      %c0_34 = arith.constant 0 : index
      %c0_35 = arith.constant 0 : index
      %34 = vector.load %arg7[%c0_34, %c0_35] : memref<1x1xf32, #tpu.memory_space<vmem>>, vector<1x1xf32>
      %35 = vector.broadcast %34 : vector<1x1xf32> to vector<8x1xf32>
      %36 = arith.addf %33, %35 : vector<8x1xf32>
      %c0_36 = arith.constant 0 : index
      %c0_37 = arith.constant 0 : index
      %37 = vector.load %arg8[%c0_36, %c0_37] : memref<8x1xf32, #tpu.memory_space<vmem>>, vector<8x1xf32>
      tpu.vector_store %arg8[%c0_36, %c0_37], %36 {strides = array<i32>} : memref<8x1xf32, #tpu.memory_space<vmem>>, vector<8x1xf32>,
    } else {
    }
    return
  }
  func.func @transform_0(%arg0: i32, %arg1: i32) -> (i32, i32, i32) {
    %c0_i32 = arith.constant 0 : i32
    %c0_i32_0 = arith.constant 0 : i32
    return %arg0, %arg1, %c0_i32 : i32, i32, i32
  }
  func.func @transform_1(%arg0: i32, %arg1: i32) -> (i32, i32, i32) {
    %c0_i32 = arith.constant 0 : i32
    %c0_i32_0 = arith.constant 0 : i32
    return %arg0, %c0_i32, %arg1 : i32, i32, i32
  }
  func.func @transform_2(%arg0: i32, %arg1: i32) -> (i32, i32) {
    %c0_i32 = arith.constant 0 : i32
    %c0_i32_0 = arith.constant 0 : i32
    return %arg0, %c0_i32 : i32, i32
  }
  func.func @transform_3(%arg0: i32, %arg1: i32) -> (i32, i32) {
    %c0_i32 = arith.constant 0 : i32
    %c0_i32_0 = arith.constant 0 : i32
    %c0_i32_1 = arith.constant 0 : i32
    return %c0_i32, %c0_i32_0 : i32, i32
  }
  func.func @transform_4(%arg0: i32, %arg1: i32) -> (i32, i32) {
    %c0_i32 = arith.constant 0 : i32
    %c0_i32_0 = arith.constant 0 : i32
    %c0_i32_1 = arith.constant 0 : i32
    return %c0_i32, %c0_i32_0 : i32, i32
  }
  func.func @transform_5(%arg0: i32, %arg1: i32) -> (i32, i32) {
    %c0_i32 = arith.constant 0 : i32
    %c0_i32_0 = arith.constant 0 : i32
    %c0_i32_1 = arith.constant 0 : i32
    return %c0_i32, %c0_i32_0 : i32, i32
  }
  func.func @transform_6(%arg0: i32, %arg1: i32) -> (i32, i32) {
    %c0_i32 = arith.constant 0 : i32
    %c0_i32_0 = arith.constant 0 : i32
    return %arg0, %c0_i32 : i32, i32
  }
}

</mosaic_0001>

<bundles_post_ra>
// kernel: protein_bert_pli_forward.1
= control target key start
LH: loop header
LB: loop body
LE: loop exit
PB: predicated region body
PF: predicated region fallthrough
CT: control target
= control target key end

     0   :  { %s3584_s0 = inlined_call_operand.hbm [shape: bf16[8,512,128], index: 0, kind: input, shape index: {}]   ;;  %s3585_s1 = inlined_call_operand.vmem [shape: f32[8,1,512], index: 1, kind: input, shape index: {}]   ;;  %s3586_s2 = inlined_call_operand.vmem [shape: f32[8,128], index: 2, kind: input, shape index: {}]   ;;  %s3587_s3 = inlined_call_operand.vmem [shape: f32[1,128], index: 3, kind: input, shape index: {}]   ;;  %s3588_s4 = inlined_call_operand.vmem [shape: f32[1,128], index: 4, kind: input, shape index: {}]   ;;  %s3589_s5 = inlined_call_operand.<no memory space> [shape: f32[1,1], index: 5, kind: input, shape index: {}]   ;;  %s3590_s6 = inlined_call_operand.vmem [shape: f32[8,1], index: 6, kind: output, shape index: {}]  }
   0x1   :  { %v11_v0 = vstv %s3589_s5 }
   0x2   :  { %12 = vst [vmem:[#allocation4] sm:$0x1] %v11_v0 }
   0x3   :  { %13 = vsyncpa [#allocation6], 0 }
   0x4   :  { %15 = vsyncpa [#allocation6 + $0x1], 0  ;;  %s3146_s23 = smov 0   ;;  %s3148_s24 = smov 0  }
   0x5   :  { %s3150_s25 = smov 0   ;;  %s3152_s26 = smov 0  }
   0x6   :  { %s3154_s27 = smov 0   ;;  %s3156_s28 = smov 0  }
   0x7 LB: > { %s2300_s5 = sadd.s32 4294967295, %s3098_s28   ;;  %s30_s29 = sadd.s32 1, %s3094_s27  ;;  %s3098_s28 = sphi %s3156_s28, %s21_s28   ;;  %s3094_s27 = sphi %s3154_s27, %s3605_s27   ;;  %s3090_s26 = sphi %s3152_s26, %s3604_s26   ;;  %s3086_s25 = sphi %s3150_s25, %s3603_s25   ;;  %s3082_s24 = sphi %s3148_s24, %s3602_s24   ;;  %s3078_s23 = sphi %s3146_s23, %s3601_s23  }
   0x8   : > { %p31_p0 = scmp.ge.s32.totalorder %s30_s29, 2  ;;  %s42_s30 = sadd.s32 1, %s3086_s25 }
   0x9   : > { %p49_p1 = scmp.ne.s32.totalorder %s3086_s25, %s3082_s24  ;;  %p50_p2 = scmp.eq.s32.totalorder %s3098_s28, 0 }
   0xa   : > { %s3607_s29 = smov (%p31_p0, %s30_s29), 0  ;;  %p55_p4 = scmp.ne.s32.totalorder %s3082_s24, %s3078_s23 }
   0xb   : > { %p3182_p3 = por %p50_p2, %p49_p1  ;;  %s38_s8 = ssub.s32 %s3094_s27, %s3607_s29 }
   0xc   : > { %p56_p5 = scmp.eq.s32.totalorder %s2300_s5, 0  ;;  %p40_p6 = scmp.eq.s32.totalorder %s38_s8, 0 }
   0xd   : > { %p2303_p8 = scmp.ge.s32.totalorder %s3098_s28, 2 }
   0xe   : > { %p3189_p7 = por %p56_p5, %p55_p4 }
   0xf   : > { %s3194_s10 = scalar_select %p40_p6, %s3086_s25, %s42_s30  }
  0x10   : > { %234 = sbr.rel (%p2303_p8) target bundleno = 46 (0x2e), region = 32 }
  0x15   : > { %s3198_s11 = sand.u32 1, %s3086_s25   ;;  %s2831_s12 = sshll.u32 %s3094_s27, 7 }
  0x16   : > { %s2304_s13 = sshll.u32 %s3198_s11, 10  ;;  %s250_s16 = scalar_lea.hbm %s3584_s0, %s2831_s12 }
  0x17   : > { %s2960_s17 = scalar_select %p3182_p3, [#allocation0], [#allocation10] }
  0x18   : > { %s263_s18 = sshll.u32 %s250_s16, 4  ;;  %s242_s19 = scalar_lea.vmem [#allocation5], %s2304_s13  ;;  %s264_s18 = int_to_ptr.hbm [resolvable:$true] %s263_s18 }
  0x19   : > { %s265_s20 = sshll.u32 %s242_s19, 4  ;;  %s255_s21 = sld [smem:[%s2960_s17]]   ;;  %s266_s20 = int_to_ptr.vmem [resolvable:$true] %s265_s20 }
  0x1a   : > { %s3100_s22 = smov 4096   ;;  %s3101_s23 = smov 2048  }
  0x1b   : > { %2961 = sst [smem:[#allocation9]] (%p3182_p3), %s3100_s22  ;;  %s3102_s5 = smov 32  }
  0x1c   : > { %2962 = sst [smem:[#allocation9 + $0x1]] (%p3182_p3), %s3101_s23  ;;  %s3103_s30 = smov 64  }
  0x1d   : > { %2963 = sst [smem:[#allocation9 + $0x2]] (%p3182_p3), %s3102_s5  ;;  %s3104_s13 = smov 4  }
  0x1e   : > { %2964 = sst [smem:[#allocation9 + $0x3]] (%p3182_p3), %s3103_s30  ;;  %s239_s14 = scalar_lea.sflag [#allocation6], %s3198_s11 }
  0x1f   : > { %s2307_s8 = sshll.u32 %s255_s21, 26  ;;  %2965 = sst [smem:[#allocation9 + $0x4]] (%p3182_p3), %s3103_s30 }
  0x20   : > { %s2308_s12 = sadd.s32 134217728, %s2307_s8  ;;  %2966 = sst [smem:[#allocation9 + $0x5]] (%p3182_p3), %s3104_s13 }
  0x21   : > { %s3105_s15 = smov [#allocation8]   ;;  %287 = sbr.rel (!%p3182_p3) target bundleno = 46 (0x2e), region = 40 }
  0x22   : > { %2967 = dma.general (%p3182_p3), %s264_s18, 16384, %s266_s20, %s239_s14, %s3105_s15, [#allocation9], %s2308_s12, 0  }
  0x23   : > { %s2309_s16 = sshll.u32 (%p3182_p3), %s3198_s11, 4  ;;  %s2310_s17 = sshll.u32 (%p3182_p3), %s3094_s27, 1 }
  0x24   : > { %s296_s21 = scalar_lea.vmem (%p3182_p3), %s3585_s1, %s2310_s17  ;;  %s291_s23 = scalar_lea.vmem (%p3182_p3), [#allocation7], %s2309_s16 }
  0x25   : > { %v313_v1 = vld [vmem:[%s296_s21] sm:$0x3] (%p3182_p3)  ;;  %v315_v2 = vld [vmem:[%s296_s21 + $0x4] sm:$0x3] (%p3182_p3)  ;;  %v317_v3 = vld [vmem:[%s296_s21 + $0x8] sm:$0x3] (%p3182_p3) }
  0x26   : > { %314 = vst [vmem:[%s291_s23] sm:$0x3] %v313_v1  ;;  %v319_v4 = vld [vmem:[%s296_s21 + $0xc] sm:$0x3]  ;;  %v321_v5 = vld [vmem:[%s296_s21 + $0x10] sm:$0x3] }
  0x27   : > { %316 = vst [vmem:[%s291_s23 + $0x2] sm:$0x3] %v315_v2  ;;  %v323_v6 = vld [vmem:[%s296_s21 + $0x14] sm:$0x3]  ;;  %v325_v7 = vld [vmem:[%s296_s21 + $0x18] sm:$0x3] }
  0x28   : > { %318 = vst [vmem:[%s291_s23 + $0x4] sm:$0x3] %v317_v3  ;;  %v327_v8 = vld [vmem:[%s296_s21 + $0x1c] sm:$0x3] }
  0x29   : > { %320 = vst [vmem:[%s291_s23 + $0x6] sm:$0x3] %v319_v4 }
  0x2a   : > { %322 = vst [vmem:[%s291_s23 + $0x8] sm:$0x3] %v321_v5 }
  0x2b   : > { %324 = vst [vmem:[%s291_s23 + $0xa] sm:$0x3] %v323_v6 }
  0x2c   : > { %326 = vst [vmem:[%s291_s23 + $0xc] sm:$0x3] %v325_v7 }
  0x2d   : > { %328 = vst [vmem:[%s291_s23 + $0xe] sm:$0x3] %v327_v8 }
  0x2e PF: > { %p2311_p9 = scmp.ge.s32.totalorder %s3098_s28, 1  ;;  %p367_p10 = scmp.lt.s32.totalorder %s3098_s28, 3 }
  0x30   : > { %p368_p11 = pnand %p2311_p9, %p367_p10 }
  0x31   : > { %s373_s7 = sand.u32 (!%p368_p11), 1, %s3082_s24  }
  0x32   : > { %371 = sbr.rel (%p368_p11) target bundleno = 652 (0x28c), region = 81  ;;  %s2312_s11 = sshll.u32 (!%p368_p11), %s373_s7, 10 }
  0x33   : > { %s374_s18 = scalar_lea.sflag (!%p368_p11), [#allocation6], %s373_s7  ;;  %s3232_s20 = scalar_lea.vmem (!%p368_p11), [#allocation5], %s2312_s11 }
  0x37   : > { %3073 = dma.done.wait (%p3189_p7), %s374_s18, 16384  }
  0x38   : > { %3075 = vsyncadd (%p3189_p7), %s374_s18, 4294950912  ;;  %s2313_s5 = sshll.u32 %s373_s7, 4  ;;  %p2314_p12 = scmp.ne.s32.totalorder %s3090_s26, 0 }
  0x39   : > { %s3238_s30 = scalar_lea.vmem [#allocation7], %s2313_s5 }
  0x3a   : > { %436 = sbr.rel (%p2314_p12) target bundleno = 80 (0x50), region = 93 }
  0x3f   : > { %v3106_v9 = vmov 0.0   ;;  %vm445_vm0 = vcmask 0  }
  0x40   : > { %437 = vst [vmem:[#allocation2] sm:$0x1] %v3106_v9 }
  0x41   : > { %438 = vst [vmem:[#allocation2 + $0x1] sm:$0x1] %v3106_v9 }
  0x42   : > { %439 = vst [vmem:[#allocation2 + $0x2] sm:$0x1] %v3106_v9 }
  0x43   : > { %440 = vst [vmem:[#allocation2 + $0x3] sm:$0x1] %v3106_v9 }
  0x44   : > { %441 = vst [vmem:[#allocation2 + $0x4] sm:$0x1] %v3106_v9 }
  0x45   : > { %442 = vst [vmem:[#allocation2 + $0x5] sm:$0x1] %v3106_v9 }
  0x46   : > { %443 = vst [vmem:[#allocation2 + $0x6] sm:$0x1] %v3106_v9 }
  0x47   : > { %444 = vst [vmem:[#allocation2 + $0x7] sm:$0x1] %v3106_v9 }
  0x48   : > { %446 = vst.msk [vmem:[#allocation3] sm:$0x1] %vm445_vm0, %v3106_v9 }
  0x49   : > { %447 = vst.msk [vmem:[#allocation3 + $0x1] sm:$0x1] %vm445_vm0, %v3106_v9 }
  0x4a   : > { %448 = vst.msk [vmem:[#allocation3 + $0x2] sm:$0x1] %vm445_vm0, %v3106_v9 }
  0x4b   : > { %449 = vst.msk [vmem:[#allocation3 + $0x3] sm:$0x1] %vm445_vm0, %v3106_v9 }
  0x4c   : > { %450 = vst.msk [vmem:[#allocation3 + $0x4] sm:$0x1] %vm445_vm0, %v3106_v9 }
  0x4d   : > { %451 = vst.msk [vmem:[#allocation3 + $0x5] sm:$0x1] %vm445_vm0, %v3106_v9 }
  0x4e   : > { %452 = vst.msk [vmem:[#allocation3 + $0x6] sm:$0x1] %vm445_vm0, %v3106_v9 }
  0x4f   : > { %453 = vst.msk [vmem:[#allocation3 + $0x7] sm:$0x1] %vm445_vm0, %v3106_v9 }
  0x50 PF: > { %v2839_v10 = vld [vmem:[%s3232_s20 + $0x38] sm:$0xff]  ;;  %v2838_v14 = vld [vmem:[%s3232_s20 + $0x30] sm:$0xff]  ;;  %v2837_v18 = vld [vmem:[%s3232_s20 + $0x28] sm:$0xff]  ;;  %vm1830_vm1 = vcmask 1040384   ;;  %vm1879_vm2 = vcmask 0   ;;  %p2827_p13 = scmp.ne.s32.totalorder %s3090_s26, 1 }
  0x51   : > { %v2847_v11 = vld [vmem:[%s3232_s20 + $0x78] sm:$0xff]  ;;  %877 = vmatpush.bf16.msra.mxu0 %v2839_v10  ;;  %v2846_v15 = vld [vmem:[%s3232_s20 + $0x70] sm:$0xff]  ;;  %v2845_v19 = vld [vmem:[%s3232_s20 + $0x68] sm:$0xff] }
  0x52   : > { %v2855_v12 = vld [vmem:[%s3232_s20 + $0xb8] sm:$0xff]  ;;  %890 = vmatpush.bf16.msra.mxu1 %v2847_v11  ;;  %v2854_v16 = vld [vmem:[%s3232_s20 + $0xb0] sm:$0xff]  ;;  %v2853_v20 = vld [vmem:[%s3232_s20 + $0xa8] sm:$0xff] }
  0x53   : > { %v2863_v13 = vld [vmem:[%s3232_s20 + $0xf8] sm:$0xff]  ;;  %1006 = vmatpush.bf16.msra.mxu2 %v2855_v12  ;;  %v2862_v17 = vld [vmem:[%s3232_s20 + $0xf0] sm:$0xff]  ;;  %v2861_v21 = vld [vmem:[%s3232_s20 + $0xe8] sm:$0xff] }
  0x54   : > { %1019 = vmatpush.bf16.msra.mxu3 %v2863_v13  ;;  %v2836_v22 = vld [vmem:[%s3232_s20 + $0x20] sm:$0xff]  ;;  %v2835_v26 = vld [vmem:[%s3232_s20 + $0x18] sm:$0xff]  ;;  %v2834_v31 = vld [vmem:[%s3232_s20 + $0x10] sm:$0xff] }
  0x55   : > { %878 = vmatpush.bf16.msra.mxu0 %v2838_v14  ;;  %v2844_v23 = vld [vmem:[%s3232_s20 + $0x60] sm:$0xff]  ;;  %v2843_v27 = vld [vmem:[%s3232_s20 + $0x58] sm:$0xff]  ;;  %v2842_v32 = vld [vmem:[%s3232_s20 + $0x50] sm:$0xff] }
  0x56   : > { %891 = vmatpush.bf16.msra.mxu1 %v2846_v15  ;;  %v2852_v24 = vld [vmem:[%s3232_s20 + $0xa0] sm:$0xff]  ;;  %v2851_v28 = vld [vmem:[%s3232_s20 + $0x98] sm:$0xff]  ;;  %v2850_v35 = vld [vmem:[%s3232_s20 + $0x90] sm:$0xff] }
  0x57   : > { %1007 = vmatpush.bf16.msra.mxu2 %v2854_v16  ;;  %v2860_v25 = vld [vmem:[%s3232_s20 + $0xe0] sm:$0xff]  ;;  %v2859_v29 = vld [vmem:[%s3232_s20 + $0xd8] sm:$0xff]  ;;  %v2858_v36 = vld [vmem:[%s3232_s20 + $0xd0] sm:$0xff] }
  0x58   : > { %1020 = vmatpush.bf16.msra.mxu3 %v2862_v17  ;;  %v3262_v30 = vld [vmem:[%s3238_s30 + $0x2] sm:$0x3]  ;;  %v3271_v37 = vld [vmem:[%s3238_s30] sm:$0x3]  ;;  %v2833_v40 = vld [vmem:[%s3232_s20 + $0x8] sm:$0xff] }
  0x59   : > { %879 = vmatpush.bf16.msra.mxu0 %v2837_v18  ;;  %v736_v33 = vperm.slane %v3262_v30, 0  ;;  %v737_v34 = vperm.slane %v3262_v30, 1  ;;  %v734_v38 = vperm.slane %v3271_v37, 0  ;;  %v735_v39 = vperm.slane %v3271_v37, 1  ;;  %v2841_v41 = vld [vmem:[%s3232_s20 + $0x48] sm:$0xff]  ;;  %v2832_v46 = vld [vmem:[%s3232_s20] sm:$0xff] }
  0x5a   : > { %892 = vmatpush.bf16.msra.mxu1 %v2845_v19  ;;  %v2849_v43 = vld [vmem:[%s3232_s20 + $0x88] sm:$0xff]  ;;  %v2840_v47 = vld [vmem:[%s3232_s20 + $0x40] sm:$0xff]  ;;  %v2871_v54 = vld [vmem:[%s3232_s20 + $0x138] sm:$0xff] }
  0x5b   : > { %1008 = vmatpush.bf16.msra.mxu2 %v2853_v20  ;;  %v767_v42 = vpack.c.bf16 %v737_v34, %v736_v33  ;;  %v2857_v44 = vld [vmem:[%s3232_s20 + $0xc8] sm:$0xff]  ;;  %v766_v45 = vpack.c.bf16 %v735_v39, %v734_v38  ;;  %v2848_v50 = vld [vmem:[%s3232_s20 + $0x80] sm:$0xff]  ;;  %v2879_v55 = vld [vmem:[%s3232_s20 + $0x178] sm:$0xff] }
  0x5c   : > { %1021 = vmatpush.bf16.msra.mxu3 %v2861_v21  ;;  %v2856_v51 = vld [vmem:[%s3232_s20 + $0xc0] sm:$0xff]  ;;  %v2887_v56 = vld [vmem:[%s3232_s20 + $0x1b8] sm:$0xff]  ;;  %v2870_v62 = vld [vmem:[%s3232_s20 + $0x130] sm:$0xff] }
  0x5d   : > { %880 = vmatpush.bf16.msra.mxu0 %v2836_v22  ;;  %v904_v48 = vunpack.c.l.b16 %v767_v42  ;;  %v905_v49 = vunpack.c.h.b16 %v767_v42  ;;  %v775_v52 = vunpack.c.l.b16 %v766_v45  ;;  %v776_v53 = vunpack.c.h.b16 %v766_v45  ;;  %v2895_v57 = vld [vmem:[%s3232_s20 + $0x1f8] sm:$0xff]  ;;  %v2878_v63 = vld [vmem:[%s3232_s20 + $0x170] sm:$0xff]  ;;  %v2869_v2 = vld [vmem:[%s3232_s20 + $0x128] sm:$0xff] }
  0x5e   : > { %893 = vmatpush.bf16.msra.mxu1 %v2844_v23  ;;  %v2886_v0 = vld [vmem:[%s3232_s20 + $0x1b0] sm:$0xff]  ;;  %v2877_v3 = vld [vmem:[%s3232_s20 + $0x168] sm:$0xff]  ;;  %v2868_v6 = vld [vmem:[%s3232_s20 + $0x120] sm:$0xff] }
  0x5f   : > { %1009 = vmatpush.bf16.msra.mxu2 %v2852_v24  ;;  %v906_v58 = vpack.c.b16 %v904_v48, %v904_v48  ;;  %v907_v59 = vpack.c.b16 %v905_v49, %v905_v49  ;;  %v777_v60 = vpack.c.b16 %v775_v52, %v775_v52  ;;  %v778_v61 = vpack.c.b16 %v776_v53, %v776_v53  ;;  %v2894_v1 = vld [vmem:[%s3232_s20 + $0x1f0] sm:$0xff]  ;;  %v2885_v4 = vld [vmem:[%s3232_s20 + $0x1a8] sm:$0xff]  ;;  %v2876_v7 = vld [vmem:[%s3232_s20 + $0x160] sm:$0xff] }
  0x60   : > { %1022 = vmatpush.bf16.msra.mxu3 %v2860_v25  ;;  %v2893_v5 = vld [vmem:[%s3232_s20 + $0x1e8] sm:$0xff]  ;;  %v2884_v8 = vld [vmem:[%s3232_s20 + $0x1a0] sm:$0xff]  ;;  %v2867_v10 = vld [vmem:[%s3232_s20 + $0x118] sm:$0xff] }
  0x61   : > { %881 = vmatpush.bf16.msra.mxu0 %v2835_v26  ;;  %v2892_v9 = vld [vmem:[%s3232_s20 + $0x1e0] sm:$0xff]  ;;  %v2875_v11 = vld [vmem:[%s3232_s20 + $0x158] sm:$0xff]  ;;  %v2866_v15 = vld [vmem:[%s3232_s20 + $0x110] sm:$0xff] }
  0x62   : > { %894 = vmatpush.bf16.msra.mxu1 %v2843_v27  ;;  %v2883_v12 = vld [vmem:[%s3232_s20 + $0x198] sm:$0xff]  ;;  %v3312_v14 = vld [vmem:[%s3238_s30 + $0x6] sm:$0x3]  ;;  %v3319_v19 = vld [vmem:[%s3238_s30 + $0x4] sm:$0x3] }
  0x63   : > { %1010 = vmatpush.bf16.msra.mxu2 %v2851_v28  ;;  %v2891_v13 = vld [vmem:[%s3232_s20 + $0x1d8] sm:$0xff]  ;;  %v2874_v16 = vld [vmem:[%s3232_s20 + $0x150] sm:$0xff]  ;;  %v740_v17 = vperm.slane %v3312_v14, 0  ;;  %v741_v18 = vperm.slane %v3312_v14, 1  ;;  %v738_v22 = vperm.slane %v3319_v19, 0  ;;  %v739_v23 = vperm.slane %v3319_v19, 1 }
  0x64   : > { %1023 = vmatpush.bf16.msra.mxu3 %v2859_v29  ;;  %v2882_v20 = vld [vmem:[%s3232_s20 + $0x190] sm:$0xff]  ;;  %v2865_v24 = vld [vmem:[%s3232_s20 + $0x108] sm:$0xff]  ;;  %v2911_v45 = vld [vmem:[%s3232_s20 + $0x278] sm:$0xff] }
  0x65   : > { %882 = vmatpush.bf16.msra.mxu0 %v2834_v31  ;;  %v2890_v21 = vld [vmem:[%s3232_s20 + $0x1d0] sm:$0xff]  ;;  %v2873_v25 = vld [vmem:[%s3232_s20 + $0x148] sm:$0xff]  ;;  %v769_v26 = vpack.c.bf16 %v741_v18, %v740_v17  ;;  %v768_v29 = vpack.c.bf16 %v739_v23, %v738_v22  ;;  %v2864_v31 = vld [vmem:[%s3232_s20 + $0x100] sm:$0xff] }
  0x66   : > { %895 = vmatpush.bf16.msra.mxu1 %v2842_v32  ;;  %v2881_v27 = vld [vmem:[%s3232_s20 + $0x188] sm:$0xff]  ;;  %v2872_v32 = vld [vmem:[%s3232_s20 + $0x140] sm:$0xff]  ;;  %v2902_v52 = vld [vmem:[%s3232_s20 + $0x230] sm:$0xff] }
  0x67   : > { %1011 = vmatpush.bf16.msra.mxu2 %v2850_v35  ;;  %v2889_v28 = vld [vmem:[%s3232_s20 + $0x1c8] sm:$0xff]  ;;  %v1162_v35 = vunpack.c.l.b16 %v769_v26  ;;  %v1033_v42 = vunpack.c.l.b16 %v768_v29  ;;  %v2910_v53 = vld [vmem:[%s3232_s20 + $0x270] sm:$0xff]  ;;  %v2948_v30 = vld [vmem:[%s3232_s20 + $0x3a0] sm:$0xff] }
  0x68   : > { %1024 = vmatpush.bf16.msra.mxu3 %v2858_v36  ;;  %v1163_v36 = vunpack.c.h.b16 %v769_v26  ;;  %v2896_v26 = vld [vmem:[%s3232_s20 + $0x200] sm:$0xff]  ;;  %v2941_v37 = vld [vmem:[%s3232_s20 + $0x368] sm:$0xff] }
  0x69   : > { %883 = vmatpush.bf16.msra.mxu0 %v2833_v40  ;;  %v2880_v40 = vld [vmem:[%s3232_s20 + $0x180] sm:$0xff]  ;;  %v1164_v48 = vpack.c.b16 %v1162_v35, %v1162_v35 }
  0x6a   : > { %896 = vmatpush.bf16.msra.mxu1 %v2841_v41  ;;  %v2888_v41 = vld [vmem:[%s3232_s20 + $0x1c0] sm:$0xff]  ;;  %v1165_v49 = vpack.c.b16 %v1163_v36, %v1163_v36 }
  0x6b   : > { %1012 = vmatpush.bf16.msra.mxu2 %v2849_v43  ;;  %v1034_v43 = vunpack.c.h.b16 %v768_v29 }
  0x6c   : > { %1025 = vmatpush.bf16.msra.mxu3 %v2857_v44  ;;  %v2903_v44 = vld [vmem:[%s3232_s20 + $0x238] sm:$0xff] }
  0x6d   : > { %884 = vmatpush.bf16.msra.mxu0 %v2832_v46  ;;  %v2919_v46 = vld [vmem:[%s3232_s20 + $0x2b8] sm:$0xff] }
  0x6e   : > { %897 = vmatpush.bf16.msra.mxu1 %v2840_v47  ;;  %v2927_v47 = vld [vmem:[%s3232_s20 + $0x2f8] sm:$0xff] }
  0x6f   : > { %1013 = vmatpush.bf16.msra.mxu2 %v2848_v50  ;;  %v1035_v50 = vpack.c.b16 %v1033_v42, %v1033_v42  ;;  %v2951_v42 = vld [vmem:[%s3232_s20 + $0x3b8] sm:$0xff] }
  0x70   : > { %1026 = vmatpush.bf16.msra.mxu3 %v2856_v51  ;;  %885 = vmatmul.bf16.vlgmr.msra.gmra.mxu0 %v777_v60  ;;  %v1036_v51 = vpack.c.b16 %v1034_v43, %v1034_v43  ;;  %v2900_v60 = vld [vmem:[%s3232_s20 + $0x220] sm:$0xff]  ;;  %v2959_v43 = vld [vmem:[%s3232_s20 + $0x3f8] sm:$0xff] }
  0x71   : > { %1135 = vmatpush.bf16.msrb.mxu0 %v2871_v54  ;;  %898 = vmatmul.bf16.vlgmr.msra.gmra.mxu1 %v778_v61  ;;  %v2918_v54 = vld [vmem:[%s3232_s20 + $0x2b0] sm:$0xff]  ;;  %v2908_v61 = vld [vmem:[%s3232_s20 + $0x260] sm:$0xff] }
  0x72   : > { %1148 = vmatpush.bf16.msrb.mxu1 %v2879_v55  ;;  %1014 = vmatmul.bf16.vlgmr.msra.gmra.mxu2 %v906_v58  ;;  %v2926_v55 = vld [vmem:[%s3232_s20 + $0x2f0] sm:$0xff]  ;;  %v2917_v58 = vld [vmem:[%s3232_s20 + $0x2a8] sm:$0xff] }
  0x73   : > { %1264 = vmatpush.bf16.msrb.mxu2 %v2887_v56  ;;  %1027 = vmatmul.bf16.vlgmr.msra.gmra.mxu3 %v907_v59  ;;  %v2901_v56 = vld [vmem:[%s3232_s20 + $0x228] sm:$0xff] }
  0x74   : > { %1277 = vmatpush.bf16.msrb.mxu3 %v2895_v57  ;;  %v2909_v57 = vld [vmem:[%s3232_s20 + $0x268] sm:$0xff] }
  0x75   : > { %1136 = vmatpush.bf16.msrb.mxu0 %v2870_v62  ;;  %v2925_v59 = vld [vmem:[%s3232_s20 + $0x2e8] sm:$0xff]  ;;  %v2916_v62 = vld [vmem:[%s3232_s20 + $0x2a0] sm:$0xff] }
  0x76   : > { %1149 = vmatpush.bf16.msrb.mxu1 %v2878_v63  ;;  %v2924_v63 = vld [vmem:[%s3232_s20 + $0x2e0] sm:$0xff] }
  0x77   : > { %1265 = vmatpush.bf16.msrb.mxu2 %v2886_v0  ;;  %v2899_v0 = vld [vmem:[%s3232_s20 + $0x218] sm:$0xff] }
  0x78   : > { %1278 = vmatpush.bf16.msrb.mxu3 %v2894_v1  ;;  %v2907_v1 = vld [vmem:[%s3232_s20 + $0x258] sm:$0xff] }
  0x79   : > { %1137 = vmatpush.bf16.msrb.mxu0 %v2869_v2  ;;  %v2915_v2 = vld [vmem:[%s3232_s20 + $0x298] sm:$0xff] }
  0x7a   : > { %1150 = vmatpush.bf16.msrb.mxu1 %v2877_v3  ;;  %v2923_v3 = vld [vmem:[%s3232_s20 + $0x2d8] sm:$0xff] }
  0x7b   : > { %1266 = vmatpush.bf16.msrb.mxu2 %v2885_v4  ;;  %v3362_v4 = vld [vmem:[%s3238_s30 + $0xa] sm:$0x3] }
  0x7c   : > { %1279 = vmatpush.bf16.msrb.mxu3 %v2893_v5  ;;  %v3365_v5 = vld [vmem:[%s3238_s30 + $0x8] sm:$0x3] }
  0x7d   : > { %1138 = vmatpush.bf16.msrb.mxu0 %v2868_v6  ;;  %v2898_v6 = vld [vmem:[%s3232_s20 + $0x210] sm:$0xff] }
  0x7e   : > { %1151 = vmatpush.bf16.msrb.mxu1 %v2876_v7  ;;  %v2906_v7 = vld [vmem:[%s3232_s20 + $0x250] sm:$0xff] }
  0x7f   : > { %1267 = vmatpush.bf16.msrb.mxu2 %v2884_v8  ;;  %v744_v8 = vperm.slane %v3362_v4, 0 }
  0x80   : > { %1280 = vmatpush.bf16.msrb.mxu3 %v2892_v9  ;;  %v745_v9 = vperm.slane %v3362_v4, 1  ;;  %v2947_v4 = vld [vmem:[%s3232_s20 + $0x398] sm:$0xff] }
  0x81   : > { %1139 = vmatpush.bf16.msrb.mxu0 %v2867_v10  ;;  %v2914_v10 = vld [vmem:[%s3232_s20 + $0x290] sm:$0xff]  ;;  %v1856_v14 = vsel %vm1830_vm1, %v744_v8, 0.0 }
  0x82   : > { %1152 = vmatpush.bf16.msrb.mxu1 %v2875_v11  ;;  %v2922_v11 = vld [vmem:[%s3232_s20 + $0x2d0] sm:$0xff] }
  0x83   : > { %1268 = vmatpush.bf16.msrb.mxu2 %v2883_v12  ;;  %v742_v12 = vperm.slane %v3365_v5, 0 }
  0x84   : > { %1281 = vmatpush.bf16.msrb.mxu3 %v2891_v13  ;;  %v743_v13 = vperm.slane %v3365_v5, 1  ;;  %v2931_v5 = vld [vmem:[%s3232_s20 + $0x318] sm:$0xff] }
  0x85   : > { %1140 = vmatpush.bf16.msrb.mxu0 %v2866_v15  ;;  %v2897_v15 = vld [vmem:[%s3232_s20 + $0x208] sm:$0xff] }
  0x86   : > { %1153 = vmatpush.bf16.msrb.mxu1 %v2874_v16  ;;  %v2905_v16 = vld [vmem:[%s3232_s20 + $0x248] sm:$0xff]  ;;  %v1852_v19 = vsel %vm1830_vm1, %v743_v13, 0.0 }
  0x87   : > { %1269 = vmatpush.bf16.msrb.mxu2 %v2882_v20  ;;  %v771_v20 = vpack.c.bf16 %v745_v9, %v744_v8 }
  0x88   : > { %1282 = vmatpush.bf16.msrb.mxu3 %v2890_v21  ;;  %v2913_v21 = vld [vmem:[%s3232_s20 + $0x288] sm:$0xff] }
  0x89   : > { %1141 = vmatpush.bf16.msrb.mxu0 %v2865_v24  ;;  %v2921_v24 = vld [vmem:[%s3232_s20 + $0x2c8] sm:$0xff]  ;;  %v1421_v29 = vunpack.c.h.b16 %v771_v20 }
  0x8a   : > { %1154 = vmatpush.bf16.msrb.mxu1 %v2873_v25  ;;  %v770_v25 = vpack.c.bf16 %v743_v13, %v742_v12 }
  0x8b   : > { %1270 = vmatpush.bf16.msrb.mxu2 %v2881_v27  ;;  %v2904_v27 = vld [vmem:[%s3232_s20 + $0x240] sm:$0xff] }
  0x8c   : > { %1283 = vmatpush.bf16.msrb.mxu3 %v2889_v28  ;;  %v1420_v28 = vunpack.c.l.b16 %v771_v20  ;;  %v1291_v35 = vunpack.c.l.b16 %v770_v25  ;;  %v1292_v36 = vunpack.c.h.b16 %v770_v25  ;;  %v2930_v20 = vld [vmem:[%s3232_s20 + $0x310] sm:$0xff] }
  0x8d   : > { %1142 = vmatpush.bf16.msrb.mxu0 %v2864_v31  ;;  %v2912_v31 = vld [vmem:[%s3232_s20 + $0x280] sm:$0xff]  ;;  %v2954_v25 = vld [vmem:[%s3232_s20 + $0x3d0] sm:$0xff] }
  0x8e   : > { %1155 = vmatpush.bf16.msrb.mxu1 %v2872_v32  ;;  %v2920_v32 = vld [vmem:[%s3232_s20 + $0x2c0] sm:$0xff] }
  0x8f   : > { %1271 = vmatpush.bf16.msrb.mxu2 %v2880_v40  ;;  %v2935_v40 = vld [vmem:[%s3232_s20 + $0x338] sm:$0xff] }
  0x90   : > { %1284 = vmatpush.bf16.msrb.mxu3 %v2888_v41  ;;  %1143 = vmatmul.bf16.vlgmr.msrb.gmra.mxu0 %v1035_v50  ;;  %v2943_v41 = vld [vmem:[%s3232_s20 + $0x378] sm:$0xff]  ;;  %v2950_v50 = vld [vmem:[%s3232_s20 + $0x3b0] sm:$0xff] }
  0x91   : > { %1393 = vmatpush.bf16.msra.mxu0 %v2903_v44  ;;  %1156 = vmatmul.bf16.vlgmr.msrb.gmra.mxu1 %v1036_v51  ;;  %v1422_v44 = vpack.c.b16 %v1420_v28, %v1420_v28  ;;  %v2958_v51 = vld [vmem:[%s3232_s20 + $0x3f0] sm:$0xff] }
  0x92   : > { %1406 = vmatpush.bf16.msra.mxu1 %v2911_v45  ;;  %1272 = vmatmul.bf16.vlgmr.msrb.gmra.mxu2 %v1164_v48  ;;  %v1423_v45 = vpack.c.b16 %v1421_v29, %v1421_v29  ;;  %v2934_v48 = vld [vmem:[%s3232_s20 + $0x330] sm:$0xff]  ;;  %v2929_v29 = vld [vmem:[%s3232_s20 + $0x308] sm:$0xff] }
  0x93   : > { %1522 = vmatpush.bf16.msra.mxu2 %v2919_v46  ;;  %1285 = vmatmul.bf16.vlgmr.msrb.gmra.mxu3 %v1165_v49  ;;  %v1293_v46 = vpack.c.b16 %v1291_v35, %v1291_v35  ;;  %v2942_v49 = vld [vmem:[%s3232_s20 + $0x370] sm:$0xff]  ;;  %v2945_v35 = vld [vmem:[%s3232_s20 + $0x388] sm:$0xff] }
  0x94   : > { %1535 = vmatpush.bf16.msra.mxu3 %v2927_v47  ;;  %v1294_v47 = vpack.c.b16 %v1292_v36, %v1292_v36  ;;  %v2953_v36 = vld [vmem:[%s3232_s20 + $0x3c8] sm:$0xff] }
  0x95   : > { %1394 = vmatpush.bf16.msra.mxu0 %v2902_v52  ;;  %v1841_v52 = vsel %vm1830_vm1, %v738_v22, 0.0  ;;  %v1851_v22 = vsel %vm1830_vm1, %v742_v12, 0.0 }
  0x96   : > { %1407 = vmatpush.bf16.msra.mxu1 %v2910_v53  ;;  %v1842_v53 = vsel %vm1830_vm1, %v739_v23, 0.0  ;;  %v1853_v23 = vadd.f32 %v1852_v19, %v1851_v22  ;;  %v719_v22 = vld [vmem:[#allocation2 + $0x1] sm:$0x1] }
  0x97   : > { %1523 = vmatpush.bf16.msra.mxu2 %v2918_v54  ;;  %v1831_v54 = vsel %vm1830_vm1, %v734_v38, 0.0  ;;  %v2933_v38 = vld [vmem:[%s3232_s20 + $0x328] sm:$0xff] }
  0x98   : > { %1536 = vmatpush.bf16.msra.mxu3 %v2926_v55  ;;  %v1832_v55 = vsel %vm1830_vm1, %v735_v39, 0.0  ;;  %v2949_v39 = vld [vmem:[%s3232_s20 + $0x3a8] sm:$0xff]  ;;  %1854 = vadd.xlane.f32.xlu2 %v1853_v23 }
  0x99   : > { %1395 = vmatpush.bf16.msra.mxu0 %v2901_v56  ;;  %v1843_v56 = vadd.f32 %v1842_v53, %v1841_v52  ;;  %v718_v53 = vld [vmem:[#allocation2] sm:$0x1] }
  0x9a   : > { %1408 = vmatpush.bf16.msra.mxu1 %v2909_v57  ;;  %v1833_v57 = vadd.f32 %v1832_v55, %v1831_v54 }
  0x9b   : > { %1524 = vmatpush.bf16.msra.mxu2 %v2917_v58  ;;  %v2957_v58 = vld [vmem:[%s3232_s20 + $0x3e8] sm:$0xff]  ;;  %1844 = vadd.xlane.f32.xlu1 %v1843_v56 }
  0x9c   : > { %1537 = vmatpush.bf16.msra.mxu3 %v2925_v59  ;;  %1834 = vadd.xlane.f32.xlu0 %v1833_v57  ;;  %v1846_v59 = vsel %vm1830_vm1, %v740_v17, 0.0  ;;  %v1857_v17 = vsel %vm1830_vm1, %v745_v9, 0.0 }
  0x9d   : > { %1396 = vmatpush.bf16.msra.mxu0 %v2900_v60  ;;  %v1847_v60 = vsel %vm1830_vm1, %v741_v18, 0.0  ;;  %v717_v18 = vld [vmem:[%s3238_s30 + $0xe] sm:$0x3] }
  0x9e   : > { %1409 = vmatpush.bf16.msra.mxu1 %v2908_v61  ;;  %v1836_v61 = vsel %vm1830_vm1, %v736_v33, 0.0  ;;  %v2956_v33 = vld [vmem:[%s3232_s20 + $0x3e0] sm:$0xff] }
  0x9f   : > { %1525 = vmatpush.bf16.msra.mxu2 %v2916_v62  ;;  %v1837_v62 = vsel %vm1830_vm1, %v737_v34, 0.0  ;;  %v716_v34 = vld [vmem:[%s3238_s30 + $0xc] sm:$0x3] }
  0xa0   : > { %1538 = vmatpush.bf16.msra.mxu3 %v2924_v63  ;;  %v2932_v63 = vld [vmem:[%s3232_s20 + $0x320] sm:$0xff]  ;;  %v746_v8 = vperm.slane %v716_v34, 0  ;;  %v747_v9 = vperm.slane %v716_v34, 1 }
  0xa1   : > { %1397 = vmatpush.bf16.msra.mxu0 %v2899_v0  ;;  %v2940_v0 = vld [vmem:[%s3232_s20 + $0x360] sm:$0xff] }
  0xa2   : > { %1410 = vmatpush.bf16.msra.mxu1 %v2907_v1  ;;  %v1848_v1 = vadd.f32 %v1847_v60, %v1846_v59  ;;  %v772_v28 = vpack.c.bf16 %v747_v9, %v746_v8 }
  0xa3   : > { %1526 = vmatpush.bf16.msra.mxu2 %v2915_v2  ;;  %v1838_v2 = vadd.f32 %v1837_v62, %v1836_v61  ;;  %v720_v61 = vld [vmem:[#allocation2 + $0x2] sm:$0x1] }
  0xa4   : > { %1539 = vmatpush.bf16.msra.mxu3 %v2923_v3  ;;  %v1858_v3 = vadd.f32 %v1857_v17, %v1856_v14  ;;  %1849 = vadd.xlane.f32.xlu1 %v1848_v1  ;;  %v721_v17 = vld [vmem:[#allocation2 + $0x3] sm:$0x1] }
  0xa5   : > { %1398 = vmatpush.bf16.msra.mxu0 %v2898_v6  ;;  %v2939_v6 = vld [vmem:[%s3232_s20 + $0x358] sm:$0xff]  ;;  %1839 = vadd.xlane.f32.xlu0 %v1838_v2 }
  0xa6   : > { %1411 = vmatpush.bf16.msra.mxu1 %v2906_v7  ;;  %v2955_v7 = vld [vmem:[%s3232_s20 + $0x3d8] sm:$0xff]  ;;  %1859 = vadd.xlane.f32.xlu2 %v1858_v3 }
  0xa7   : > { %1527 = vmatpush.bf16.msra.mxu2 %v2914_v10  ;;  %v748_v10 = vperm.slane %v717_v18, 0 }
  0xa8   : > { %1540 = vmatpush.bf16.msra.mxu3 %v2922_v11  ;;  %v749_v11 = vperm.slane %v717_v18, 1 }
  0xa9   : > { %1399 = vmatpush.bf16.msra.mxu0 %v2897_v15  ;;  %v1866_v12 = vsel %vm1830_vm1, %v748_v10, 0.0  ;;  %v1861_v15 = vsel %vm1830_vm1, %v746_v8, 0.0 }
  0xaa   : > { %1412 = vmatpush.bf16.msra.mxu1 %v2905_v16  ;;  %v1867_v13 = vsel %vm1830_vm1, %v749_v11, 0.0  ;;  %v1862_v16 = vsel %vm1830_vm1, %v747_v9, 0.0 }
  0xab   : > { %1528 = vmatpush.bf16.msra.mxu2 %v2913_v21  ;;  %v2938_v21 = vld [vmem:[%s3232_s20 + $0x350] sm:$0xff] }
  0xac   : > { %1541 = vmatpush.bf16.msra.mxu3 %v2921_v24  ;;  %v2946_v24 = vld [vmem:[%s3232_s20 + $0x390] sm:$0xff] }
  0xad   : > { %1400 = vmatpush.bf16.msra.mxu0 %v2896_v26  ;;  %v1868_v26 = vadd.f32 %v1867_v13, %v1866_v12  ;;  %v1826_v13 = vld [vmem:[#allocation3 + $0x4] sm:$0x1] }
  0xae   : > { %1413 = vmatpush.bf16.msra.mxu1 %v2904_v27  ;;  %v1863_v27 = vadd.f32 %v1862_v16, %v1861_v15  ;;  %v1825_v15 = vld [vmem:[#allocation3 + $0x3] sm:$0x1]  ;;  %v1823_v16 = vld [vmem:[#allocation3 + $0x1] sm:$0x1] }
  0xaf   : > { %1529 = vmatpush.bf16.msra.mxu2 %v2912_v31  ;;  %v2937_v31 = vld [vmem:[%s3232_s20 + $0x348] sm:$0xff]  ;;  %1869 = vadd.xlane.f32.xlu1 %v1868_v26 }
  0xb0   : > { %1542 = vmatpush.bf16.msra.mxu3 %v2920_v32  ;;  %1401 = vmatmul.bf16.vlgmr.msra.gmra.mxu0 %v1293_v46  ;;  %v773_v32 = vpack.c.bf16 %v749_v11, %v748_v10  ;;  %v2944_v46 = vld [vmem:[%s3232_s20 + $0x380] sm:$0xff]  ;;  %v722_v10 = vld [vmem:[#allocation2 + $0x4] sm:$0x1] }
  0xb1   : > { %1651 = vmatpush.bf16.msrb.mxu0 %v2935_v40  ;;  %1414 = vmatmul.bf16.vlgmr.msra.gmra.mxu1 %v1294_v47  ;;  %v1549_v40 = vunpack.c.l.b16 %v772_v28  ;;  %v2952_v47 = vld [vmem:[%s3232_s20 + $0x3c0] sm:$0xff] }
  0xb2   : > { %1664 = vmatpush.bf16.msrb.mxu1 %v2943_v41  ;;  %1530 = vmatmul.bf16.vlgmr.msra.gmra.mxu2 %v1422_v44  ;;  %v1550_v41 = vunpack.c.h.b16 %v772_v28  ;;  %v1678_v44 = vunpack.c.l.b16 %v773_v32 }
  0xb3   : > { %1780 = vmatpush.bf16.msrb.mxu2 %v2951_v42  ;;  %1543 = vmatmul.bf16.vlgmr.msra.gmra.mxu3 %v1423_v45  ;;  %v2928_v42 = vld [vmem:[%s3232_s20 + $0x300] sm:$0xff]  ;;  %v1679_v45 = vunpack.c.h.b16 %v773_v32  ;;  %v723_v32 = vld [vmem:[#allocation2 + $0x5] sm:$0x1] }
  0xb4   : > { %1793 = vmatpush.bf16.msrb.mxu3 %v2959_v43  ;;  %1864 = vadd.xlane.f32.xlu0 %v1863_v27  ;;  %v2936_v43 = vld [vmem:[%s3232_s20 + $0x340] sm:$0xff] }
  0xb5   : > { %1652 = vmatpush.bf16.msrb.mxu0 %v2934_v48  ;;  %v1551_v48 = vpack.c.b16 %v1549_v40, %v1549_v40 }
  0xb6   : > { %1665 = vmatpush.bf16.msrb.mxu1 %v2942_v49  ;;  %v1552_v49 = vpack.c.b16 %v1550_v41, %v1550_v41 }
  0xb7   : > { %1781 = vmatpush.bf16.msrb.mxu2 %v2950_v50  ;;  %v1680_v50 = vpack.c.b16 %v1678_v44, %v1678_v44  ;;  %v1829_v44 = vld [vmem:[#allocation3 + $0x7] sm:$0x1] }
  0xb8   : > { %1794 = vmatpush.bf16.msrb.mxu3 %v2958_v51  ;;  %v1681_v51 = vpack.c.b16 %v1679_v45, %v1679_v45  ;;  %v1828_v45 = vld [vmem:[#allocation3 + $0x6] sm:$0x1] }
  0xb9   : > { %1653 = vmatpush.bf16.msrb.mxu0 %v2933_v38 }
  0xba   : > { %1666 = vmatpush.bf16.msrb.mxu1 %v2941_v37 }
  0xbb   : > { %1782 = vmatpush.bf16.msrb.mxu2 %v2949_v39 }
  0xbc   : > { %1795 = vmatpush.bf16.msrb.mxu3 %v2957_v58 }
  0xbd   : > { %1654 = vmatpush.bf16.msrb.mxu0 %v2932_v63 }
  0xbe   : > { %1667 = vmatpush.bf16.msrb.mxu1 %v2940_v0 }
  0xbf   : > { %1783 = vmatpush.bf16.msrb.mxu2 %v2948_v30 }
  0xc0   : > { %1796 = vmatpush.bf16.msrb.mxu3 %v2956_v33 }
  0xc1   : > { %1655 = vmatpush.bf16.msrb.mxu0 %v2931_v5  ;;  %v1824_v5 = vld [vmem:[#allocation3 + $0x2] sm:$0x1] }
  0xc2   : > { %1668 = vmatpush.bf16.msrb.mxu1 %v2939_v6  ;;  %v1822_v6 = vld [vmem:[#allocation3] sm:$0x1] }
  0xc3   : > { %1784 = vmatpush.bf16.msrb.mxu2 %v2947_v4 }
  0xc4   : > { %1797 = vmatpush.bf16.msrb.mxu3 %v2955_v7 }
  0xc5   : > { %1656 = vmatpush.bf16.msrb.mxu0 %v2930_v20 }
  0xc6   : > { %1669 = vmatpush.bf16.msrb.mxu1 %v2938_v21 }
  0xc7   : > { %1785 = vmatpush.bf16.msrb.mxu2 %v2946_v24 }
  0xc8   : > { %1798 = vmatpush.bf16.msrb.mxu3 %v2954_v25 }
  0xc9   : > { %1657 = vmatpush.bf16.msrb.mxu0 %v2929_v29 }
  0xca   : > { %1670 = vmatpush.bf16.msrb.mxu1 %v2937_v31 }
  0xcb   : > { %1786 = vmatpush.bf16.msrb.mxu2 %v2945_v35 }
  0xcc   : > { %1799 = vmatpush.bf16.msrb.mxu3 %v2953_v36 }
  0xcd   : > { %1658 = vmatpush.bf16.msrb.mxu0 %v2928_v42 }
  0xce   : > { %1671 = vmatpush.bf16.msrb.mxu1 %v2936_v43  ;;  %v1827_v43 = vld [vmem:[#allocation3 + $0x5] sm:$0x1] }
  0xcf   : > { %1787 = vmatpush.bf16.msrb.mxu2 %v2944_v46 }
  0xd0   : > { %1800 = vmatpush.bf16.msrb.mxu3 %v2952_v47  ;;  %1659 = vmatmul.bf16.vlgmr.msrb.gmra.mxu0 %v1551_v48 }
  0xd1   : > { %1672 = vmatmul.bf16.vlgmr.msrb.gmra.mxu1 %v1552_v49 }
  0xd2   : > { %1788 = vmatmul.bf16.vlgmr.msrb.gmra.mxu2 %v1680_v50 }
  0xd3   : > { %1801 = vmatmul.bf16.vlgmr.msrb.gmra.mxu3 %v1681_v51 }
  0xed   : > { %v886_v52 = vpop.f32.mrf.mxu0 }
  0xee   : > { %v899_v54 = vpop.f32.mrf.mxu1 }
  0xef   : > { %v900_v55 = vadd.f32 %v899_v54, %v886_v52 }
  0xf1   : > { %v1806_v56 = vadd.f32 %v900_v55, %v718_v53  ;;  %v724_v55 = vld [vmem:[#allocation2 + $0x6] sm:$0x1] }
  0xf3   : > { %1814 = vst [vmem:[#allocation2] sm:$0x1] %v1806_v56 }
  0xf5   : > { %v1015_v57 = vpop.f32.mrf.mxu2  ;;  %v888_v37 = vpop.f32.mrf.mxu0 }
  0xf6   : > { %v1028_v19 = vpop.f32.mrf.mxu3  ;;  %v901_v39 = vpop.f32.mrf.mxu1 }
  0xf7   : > { %v1029_v23 = vadd.f32 %v1028_v19, %v1015_v57 }
  0xf9   : > { %v1807_v38 = vadd.f32 %v1029_v23, %v719_v22  ;;  %v725_v23 = vld [vmem:[#allocation2 + $0x7] sm:$0x1] }
  0xfb   : > { %1815 = vst [vmem:[#allocation2 + $0x1] sm:$0x1] %v1807_v38 }
  0xfd   : > { %v1017_v58 = vpop.f32.mrf.mxu2 }
  0xfe   : > { %v1030_v59 = vpop.f32.mrf.mxu3 }
 0x10b   : > { %v1855_v21 = vpop.xlane.xlu2 %1854 }
 0x10c   : > { %v1875_v25 = vadd.f32 %v1855_v21, %v1826_v13 }
 0x10d   : > { %v1144_v60 = vpop.f32.mrf.mxu0 }
 0x10e   : > { %v1157_v62 = vpop.f32.mrf.mxu1  ;;  %v1845_v4 = vpop.xlane.xlu1 %1844  ;;  %1884 = vst.msk [vmem:[#allocation3 + $0x4] sm:$0x1] %vm1879_vm2, %v1875_v25 }
 0x10f   : > { %v1158_v63 = vadd.f32 %v1157_v62, %v1144_v60  ;;  %v1835_v7 = vpop.xlane.xlu0 %1834  ;;  %v1873_v8 = vadd.f32 %v1845_v4, %v1824_v5 }
 0x110   : > { %v1871_v9 = vadd.f32 %v1835_v7, %v1822_v6 }
 0x111   : > { %v1808_v0 = vadd.f32 %v1158_v63, %v720_v61  ;;  %1882 = vst.msk [vmem:[#allocation3 + $0x2] sm:$0x1] %vm1879_vm2, %v1873_v8 }
 0x112   : > { %1880 = vst.msk [vmem:[#allocation3] sm:$0x1] %vm1879_vm2, %v1871_v9 }
 0x113   : > { %1816 = vst [vmem:[#allocation2 + $0x2] sm:$0x1] %v1808_v0 }
 0x115   : > { %v1273_v14 = vpop.f32.mrf.mxu2  ;;  %v1146_v18 = vpop.f32.mrf.mxu0 }
 0x116   : > { %v1286_v30 = vpop.f32.mrf.mxu3  ;;  %v1159_v1 = vpop.f32.mrf.mxu1 }
 0x117   : > { %v1287_v33 = vadd.f32 %v1286_v30, %v1273_v14  ;;  %v1850_v24 = vpop.xlane.xlu1 %1849 }
 0x118   : > { %v1874_v26 = vadd.f32 %v1850_v24, %v1825_v15  ;;  %v1840_v27 = vpop.xlane.xlu0 %1839 }
 0x119   : > { %v1809_v34 = vadd.f32 %v1287_v33, %v721_v17  ;;  %v1872_v29 = vadd.f32 %v1840_v27, %v1823_v16  ;;  %v1860_v46 = vpop.xlane.xlu2 %1859 }
 0x11a   : > { %1883 = vst.msk [vmem:[#allocation3 + $0x3] sm:$0x1] %vm1879_vm2, %v1874_v26  ;;  %v1876_v48 = vadd.f32 %v1860_v46, %v1827_v43 }
 0x11b   : > { %1817 = vst [vmem:[#allocation2 + $0x3] sm:$0x1] %v1809_v34 }
 0x11c   : > { %1881 = vst.msk [vmem:[#allocation3 + $0x1] sm:$0x1] %vm1879_vm2, %v1872_v29 }
 0x11d   : > { %v1275_v2 = vpop.f32.mrf.mxu2  ;;  %1885 = vst.msk [vmem:[#allocation3 + $0x5] sm:$0x1] %vm1879_vm2, %v1876_v48 }
 0x11e   : > { %v1288_v3 = vpop.f32.mrf.mxu3 }
 0x122   : > { %v1870_v47 = vpop.xlane.xlu1 %1869 }
 0x123   : > { %v1878_v49 = vadd.f32 %v1870_v47, %v1829_v44 }
 0x125   : > { %1887 = vst.msk [vmem:[#allocation3 + $0x7] sm:$0x1] %vm1879_vm2, %v1878_v49 }
 0x127   : > { %v1865_v50 = vpop.xlane.xlu0 %1864 }
 0x128   : > { %v1877_v51 = vadd.f32 %v1865_v50, %v1828_v45 }
 0x12a   : > { %1886 = vst.msk [vmem:[#allocation3 + $0x6] sm:$0x1] %vm1879_vm2, %v1877_v51 }
 0x12d   : > { %v1402_v11 = vpop.f32.mrf.mxu0 }
 0x12e   : > { %v1415_v12 = vpop.f32.mrf.mxu1 }
 0x12f   : > { %v1416_v20 = vadd.f32 %v1415_v12, %v1402_v11 }
 0x131   : > { %v1810_v28 = vadd.f32 %v1416_v20, %v722_v10 }
 0x133   : > { %1818 = vst [vmem:[#allocation2 + $0x4] sm:$0x1] %v1810_v28 }
 0x135   : > { %v1531_v31 = vpop.f32.mrf.mxu2  ;;  %v1404_v41 = vpop.f32.mrf.mxu0 }
 0x136   : > { %v1544_v35 = vpop.f32.mrf.mxu3  ;;  %v1417_v42 = vpop.f32.mrf.mxu1 }
 0x137   : > { %v1545_v36 = vadd.f32 %v1544_v35, %v1531_v31 }
 0x139   : > { %v1811_v40 = vadd.f32 %v1545_v36, %v723_v32 }
 0x13b   : > { %1819 = vst [vmem:[#allocation2 + $0x5] sm:$0x1] %v1811_v40 }
 0x13d   : > { %v1533_v52 = vpop.f32.mrf.mxu2 }
 0x13e   : > { %v1546_v53 = vpop.f32.mrf.mxu3 }
 0x14d   : > { %v1660_v54 = vpop.f32.mrf.mxu0 }
 0x14e   : > { %v1673_v56 = vpop.f32.mrf.mxu1 }
 0x14f   : > { %v1674_v57 = vadd.f32 %v1673_v56, %v1660_v54 }
 0x151   : > { %v1812_v22 = vadd.f32 %v1674_v57, %v724_v55 }
 0x153   : > { %1820 = vst [vmem:[#allocation2 + $0x6] sm:$0x1] %v1812_v22 }
 0x155   : > { %v1789_v19 = vpop.f32.mrf.mxu2  ;;  %v1662_v39 = vpop.f32.mrf.mxu0 }
 0x156   : > { %v1802_v38 = vpop.f32.mrf.mxu3  ;;  %v1675_v58 = vpop.f32.mrf.mxu1 }
 0x157   : > { %v1803_v37 = vadd.f32 %v1802_v38, %v1789_v19 }
 0x159   : > { %v1813_v59 = vadd.f32 %v1803_v37, %v725_v23 }
 0x15a   : > { %1891 = sbr.rel (%p2827_p13) target bundleno = 652 (0x28c), region = 97 }
 0x15b   : > { %1821 = vst [vmem:[#allocation2 + $0x7] sm:$0x1] %v1813_v59 }
 0x15d   : > { %v1791_v60 = vpop.f32.mrf.mxu2 }
 0x15e   : > { %v1804_v61 = vpop.f32.mrf.mxu3 }
 0x15f   : > { %v1904_v62 = vld [vmem:[#allocation3 + $0x1] sm:$0x1]  ;;  %v1903_v63 = vld [vmem:[#allocation3] sm:$0x1]  ;;  %v3107_v0 = vmov 0   ;;  %v1894_v5 = vld [vmem:[%s3586_s2] sm:$0xff] }
 0x160   : > { %3026 = vset.pattern.permute.xlu1 %v3107_v0  ;;  %3025 = vset.pattern.permute.xlu0 %v3107_v0  ;;  %v1907_v14 = vld [vmem:[#allocation3 + $0x4] sm:$0x1]  ;;  %v1905_v17 = vld [vmem:[#allocation3 + $0x2] sm:$0x1]  ;;  %v1906_v30 = vld [vmem:[#allocation3 + $0x3] sm:$0x1] }
 0x161   : > { %1919 = vperm.xlu0 %3025, %v1904_v62   ;;  %1913 = vperm.xlu1 %3026, %v1903_v63   ;;  %v1908_v33 = vld [vmem:[#allocation3 + $0x5] sm:$0x1]  ;;  %v1909_v34 = vld [vmem:[#allocation3 + $0x6] sm:$0x1]  ;;  %v1910_v18 = vld [vmem:[#allocation3 + $0x7] sm:$0x1] }
 0x162   : > { %3027 = vset.pattern.permute.xlu2 %v3107_v0  ;;  %v3030_v3 = vld [vmem:[%s3588_s4] ss:$0 sm:$0xff]  ;;  %v1899_v31 = vld [vmem:[#allocation2 + $0x4] sm:$0x1]  ;;  %v1901_v0 = vld [vmem:[#allocation2 + $0x6] sm:$0x1] }
 0x163   : > { %1937 = vperm.xlu2 %3027, %v1907_v14   ;;  %v2114_v6 = vmul.f32 %v3030_v3, %v1894_v5  ;;  %v3492_v22 = vld [vmem:[%s3587_s3] sm:$0x1] }
 0x164   : > { %v1895_v5 = vld [vmem:[#allocation2] sm:$0x1] }
 0x169   : > { %1925 = vperm.xlu0 %3025, %v1905_v17   ;;  %1931 = vperm.xlu1 %3026, %v1906_v30  }
 0x16b   : > { %1943 = vperm.xlu2 %3027, %v1908_v33  }
 0x171   : > { %1949 = vperm.xlu0 %3025, %v1909_v34   ;;  %1955 = vperm.xlu1 %3026, %v1910_v18   ;;  %v1896_v34 = vld [vmem:[#allocation2 + $0x1] sm:$0x1] }
 0x194   : > { %2115 = vadd.xlane.f32.xlu2 %v2114_v6 }
 0x1bd   : > { %v1938_v1 = vpop.permute.xlu2 %1937 }
 0x1be   : > { %v1940_v2 = vperm.slane %v1938_v1, 0 }
 0x1c0   : > { %3032 = vrcp.f32 %v1940_v2  ;;  %vm2024_vm3 = vweird.f32 %v1940_v2  ;;  %v2030_v15 = vand.u32 2147483648, %v1940_v2  ;;  %v2028_v24 = vand.u32 2147483647, %v1940_v2 }
 0x1c2   : > { %v2031_v28 = vor.u32 1.1754944e-38, %v2030_v15  ;;  %vm2029_vm6 = vcmp.eq.f32.partialorder %v2028_v24, 8.507059e+37 }
 0x1c5   : > { %v1944_v4 = vpop.permute.xlu2 %1943 }
 0x1c6   : > { %v3033_v7 = vpop.eup %3032  ;;  %v1946_v8 = vperm.slane %v1944_v4, 0 }
 0x1c7   : > { %v2020_v9 = vmul.f32 %v3033_v7, %v1940_v2  ;;  %vm2025_vm4 = vweird.f32 %v3033_v7 }
 0x1c8   : > { %3034 = vrcp.f32 %v1946_v8  ;;  %vm2026_vm5 = vmor %vm2024_vm3, %vm2025_vm4  ;;  %vm2039_vm7 = vweird.f32 %v1946_v8  ;;  %v2043_v47 = vand.u32 2147483647, %v1946_v8  ;;  %v2045_v48 = vand.u32 2147483648, %v1946_v8 }
 0x1c9   : > { %v2021_v10 = vsub.f32 1.0, %v2020_v9 }
 0x1ca   : > { %vm3494_vm13 = vcmp.eq.f32.partialorder %v2043_v47, 8.507059e+37  ;;  %v2046_v38 = vor.u32 1.1754944e-38, %v2045_v48  ;;  %v1898_v47 = vld [vmem:[#allocation2 + $0x3] sm:$0x1]  ;;  %v1900_v48 = vld [vmem:[#allocation2 + $0x5] sm:$0x1] }
 0x1cb   : > { %v2022_v12 = vmul.f32 %v3033_v7, %v2021_v10 }
 0x1cd   : > { %v2023_v21 = vadd.f32 %v3033_v7, %v2022_v12 }
 0x1ce   : > { %v3472_v11 = vpop.eup %3034 }
 0x1cf   : > { %v2035_v13 = vmul.f32 %v3472_v11, %v1946_v8  ;;  %v2027_v29 = vsel %vm2026_vm5, %v3033_v7, %v2023_v21  ;;  %vm2040_vm8 = vweird.f32 %v3472_v11 }
 0x1d0   : > { %v2032_v32 = vsel %vm2029_vm6, %v2031_v28, %v2027_v29  ;;  %vm3485_vm9 = vmor %vm2039_vm7, %vm2040_vm8 }
 0x1d1   : > { %v2036_v27 = vsub.f32 1.0, %v2035_v13  ;;  %v2033_v46 = vmul.f32 %v2032_v32, %v1899_v31 }
 0x1d3   : > { %v1920_v16 = vpop.permute.xlu0 %1919  ;;  %v1914_v20 = vpop.permute.xlu1 %1913  ;;  %v2037_v35 = vmul.f32 %v3472_v11, %v2036_v27  ;;  %v3499_v39 = vmul.f32 %v2033_v46, %v3492_v22 }
 0x1d4   : > { %v1922_v25 = vperm.slane %v1920_v16, 0  ;;  %v1916_v26 = vperm.slane %v1914_v20, 0 }
 0x1d5   : > { %v2038_v51 = vadd.f32 %v3472_v11, %v2037_v35 }
 0x1d6   : > { %3036 = vrcp.f32 %v1922_v25  ;;  %v1983_v50 = vand.u32 2147483647, %v1922_v25  ;;  %v1985_v53 = vand.u32 2147483648, %v1922_v25  ;;  %v1970_v54 = vand.u32 2147483648, %v1916_v26 }
 0x1d7   : > { %3038 = vrcp.f32 %v1916_v26  ;;  %vm1964_vm10 = vweird.f32 %v1916_v26  ;;  %v1968_v57 = vand.u32 2147483647, %v1916_v26  ;;  %vm1979_vm14 = vweird.f32 %v1922_v25 }
 0x1d8   : > { %v2042_v58 = vsel %vm3485_vm9, %v3472_v11, %v2038_v51  ;;  %vm3504_vm15 = vcmp.eq.f32.partialorder %v1983_v50, 8.507059e+37  ;;  %v1986_v63 = vor.u32 1.1754944e-38, %v1985_v53  ;;  %v1971_v14 = vor.u32 1.1754944e-38, %v1970_v54 }
 0x1d9   : > { %vm1969_vm3 = vcmp.eq.f32.partialorder %v1968_v57, 8.507059e+37  ;;  %v2047_v4 = vsel %vm3494_vm13, %v2046_v38, %v2042_v58  ;;  %v2099_v54 = vsel %vm1830_vm1, %v3499_v39, 0.0 }
 0x1da   : > { %v2048_v23 = vmul.f32 %v2047_v4, %v1900_v48  ;;  %v1902_v4 = vld [vmem:[#allocation2 + $0x7] sm:$0x1] }
 0x1db   : > { %v1926_v36 = vpop.permute.xlu0 %1925  ;;  %v1932_v40 = vpop.permute.xlu1 %1931 }
 0x1dc   : > { %v3037_v41 = vpop.eup %3036  ;;  %v3476_v42 = vperm.slane %v1926_v36, 0  ;;  %v3478_v43 = vperm.slane %v1932_v40, 0  ;;  %v1897_v36 = vld [vmem:[#allocation2 + $0x2] sm:$0x1] }
 0x1dd   : > { %v3039_v44 = vpop.eup %3038  ;;  %v1975_v45 = vmul.f32 %v3037_v41, %v1922_v25  ;;  %vm1980_vm12 = vweird.f32 %v3037_v41  ;;  %v2145_v25 = vlaneseq }
 0x1de   : > { %v1960_v49 = vmul.f32 %v3039_v44, %v1916_v26  ;;  %3040 = vrcp.f32 %v3476_v42  ;;  %vm1965_vm11 = vweird.f32 %v3039_v44  ;;  %vm1981_vm2 = vmor %vm1979_vm14, %vm1980_vm12  ;;  %v1998_v6 = vand.u32 2147483647, %v3476_v42 }
 0x1df   : > { %v1976_v52 = vsub.f32 1.0, %v1975_v45  ;;  %3042 = vrcp.f32 %v3478_v43  ;;  %vm3510_vm0 = vmor %vm1964_vm10, %vm1965_vm11  ;;  %v2000_v16 = vand.u32 2147483648, %v3476_v42  ;;  %v2015_v20 = vand.u32 2147483648, %v3478_v43 }
 0x1e0   : > { %v1961_v56 = vsub.f32 1.0, %v1960_v49  ;;  %v2013_v28 = vand.u32 2147483647, %v3478_v43  ;;  %vm1994_vm6 = vweird.f32 %v3476_v42  ;;  %vm2009_vm7 = vweird.f32 %v3478_v43 }
 0x1e1   : > { %v1977_v19 = vmul.f32 %v3037_v41, %v1976_v52  ;;  %vm1999_vm9 = vcmp.eq.f32.partialorder %v1998_v6, 8.507059e+37  ;;  %v2001_v40 = vor.u32 1.1754944e-38, %v2000_v16 }
 0x1e2   : > { %v1962_v37 = vmul.f32 %v3039_v44, %v1961_v56  ;;  %vm2014_vm11 = vcmp.eq.f32.partialorder %v2013_v28, 8.507059e+37 }
 0x1e3   : > { %v1950_v59 = vpop.permute.xlu0 %1949  ;;  %v1956_v60 = vpop.permute.xlu1 %1955  ;;  %v1978_v61 = vadd.f32 %v3037_v41, %v1977_v19 }
 0x1e4   : > { %v3041_v17 = vpop.eup %3040  ;;  %v3514_v30 = vperm.slane %v1950_v59, 0  ;;  %v3516_v33 = vperm.slane %v1956_v60, 0  ;;  %v1963_v18 = vadd.f32 %v3039_v44, %v1962_v37 }
 0x1e5   : > { %v3043_v1 = vpop.eup %3042  ;;  %v1990_v2 = vmul.f32 %v3041_v17, %v3476_v42  ;;  %v1982_v3 = vsel %vm1981_vm2, %v3037_v41, %v1978_v61  ;;  %vm1995_vm4 = vweird.f32 %v3041_v17  ;;  %v2016_v42 = vor.u32 1.1754944e-38, %v2015_v20 }
 0x1e6   : > { %v2005_v7 = vmul.f32 %v3043_v1, %v3478_v43  ;;  %3044 = vrcp.f32 %v3514_v30  ;;  %v1987_v8 = vsel %vm3504_vm15, %v1986_v63, %v1982_v3  ;;  %v1967_v9 = vsel %vm3510_vm0, %v3039_v44, %v1963_v18  ;;  %vm1996_vm8 = vmor %vm1994_vm6, %vm1995_vm4 }
 0x1e7   : > { %v1991_v10 = vsub.f32 1.0, %v1990_v2  ;;  %3046 = vrcp.f32 %v3516_v33  ;;  %v1988_v11 = vmul.f32 %v1987_v8, %v1896_v34  ;;  %v1972_v12 = vsel %vm1969_vm3, %v1971_v14, %v1967_v9 }
 0x1e8   : > { %v2006_v13 = vsub.f32 1.0, %v2005_v7  ;;  %v1973_v15 = vmul.f32 %v1972_v12, %v1895_v5  ;;  %vm2010_vm5 = vweird.f32 %v3043_v1  ;;  %v2146_v43 = vshrl.u32 %v2145_v25, 7  ;;  %v3031_v12 = vld [vmem:[#allocation4] ss:$0 sm:$0xff] }
 0x1e9   : > { %v2080_v21 = vmul.f32 %v1988_v11, %v3492_v22  ;;  %v1992_v24 = vmul.f32 %v3041_v17, %v1991_v10  ;;  %vm2011_vm10 = vmor %vm2009_vm7, %vm2010_vm5  ;;  %v2060_v19 = vand.u32 2147483648, %v3514_v30  ;;  %v2058_v58 = vand.u32 2147483647, %v3514_v30 }
 0x1ea   : > { %v2079_v26 = vmul.f32 %v1973_v15, %v3492_v22  ;;  %v2007_v27 = vmul.f32 %v3043_v1, %v2006_v13  ;;  %3028 = vset.pattern.permute.xlu1 %v2146_v43  ;;  %3029 = vset.pattern.permute.xlu0 %v2146_v43  ;;  %vm2054_vm13 = vweird.f32 %v3514_v30  ;;  %vm2069_vm15 = vweird.f32 %v3516_v33 }
 0x1eb   : > { %v2090_v29 = vsel %vm1830_vm1, %v2080_v21, 0.0  ;;  %v1993_v31 = vadd.f32 %v3041_v17, %v1992_v24  ;;  %v2075_v62 = vand.u32 2147483648, %v3516_v33  ;;  %v2061_v14 = vor.u32 1.1754944e-38, %v2060_v19 }
 0x1ec   : > { %v3045_v32 = vpop.eup %3044  ;;  %2091 = vadd.xlane.f32.xlu0 %v2090_v29  ;;  %v2087_v35 = vsel %vm1830_vm1, %v2079_v26, 0.0  ;;  %v2008_v41 = vadd.f32 %v3043_v1, %v2007_v27  ;;  %v2073_v34 = vand.u32 2147483647, %v3516_v33  ;;  %vm2059_vm2 = vcmp.eq.f32.partialorder %v2058_v58, 8.507059e+37 }
 0x1ed   : > { %v3047_v44 = vpop.eup %3046  ;;  %v2050_v45 = vmul.f32 %v3045_v32, %v3514_v30  ;;  %2088 = vadd.xlane.f32.xlu2 %v2087_v35  ;;  %v1997_v46 = vsel %vm1996_vm8, %v3041_v17, %v1993_v31  ;;  %vm2055_vm12 = vweird.f32 %v3045_v32  ;;  %v2076_v3 = vor.u32 1.1754944e-38, %v2075_v62 }
 0x1ee   : > { %v2065_v49 = vmul.f32 %v3047_v44, %v3516_v33  ;;  %v2002_v50 = vsel %vm1999_vm9, %v2001_v40, %v1997_v46  ;;  %v2012_v51 = vsel %vm2011_vm10, %v3043_v1, %v2008_v41  ;;  %vm2070_vm14 = vweird.f32 %v3047_v44  ;;  %vm2056_vm0 = vmor %vm2054_vm13, %vm2055_vm12 }
 0x1ef   : > { %v2051_v52 = vsub.f32 1.0, %v2050_v45  ;;  %v2003_v53 = vmul.f32 %v2002_v50, %v1897_v36  ;;  %v2017_v55 = vsel %vm2014_vm11, %v2016_v42, %v2012_v51  ;;  %vm2071_vm3 = vmor %vm2069_vm15, %vm2070_vm14  ;;  %v2084_v5 = vmul.f32 %v2048_v23, %v3492_v22 }
 0x1f0   : > { %v2066_v56 = vsub.f32 1.0, %v2065_v49  ;;  %v2018_v57 = vmul.f32 %v2017_v55, %v1898_v47  ;;  %vm2074_vm4 = vcmp.eq.f32.partialorder %v2073_v34, 8.507059e+37  ;;  %vm2172_vm5 = vcmask 1042434  }
 0x1f1   : > { %v2081_v38 = vmul.f32 %v2003_v53, %v3492_v22  ;;  %v2052_v37 = vmul.f32 %v3045_v32, %v2051_v52  ;;  %v2102_v33 = vsel %vm1830_vm1, %v2084_v5, 0.0  ;;  %vm2175_vm6 = vcmask 1043459  }
 0x1f2   : > { %v2082_v59 = vmul.f32 %v2018_v57, %v3492_v22  ;;  %v2067_v60 = vmul.f32 %v3047_v44, %v2066_v56  ;;  %vm2178_vm7 = vcmask 1044484   ;;  %vm2181_vm8 = vcmask 1045509  }
 0x1f3   : > { %v2093_v39 = vsel %vm1830_vm1, %v2081_v38, 0.0  ;;  %v2053_v61 = vadd.f32 %v3045_v32, %v2052_v37  ;;  %vm2184_vm9 = vcmask 1046534   ;;  %vm2187_vm10 = vcmask 1047559  }
 0x1f4   : > { %2094 = vadd.xlane.f32.xlu1 %v2093_v39  ;;  %2100 = vadd.xlane.f32.xlu0 %v2099_v54  ;;  %v2096_v63 = vsel %vm1830_vm1, %v2082_v59, 0.0  ;;  %v2068_v17 = vadd.f32 %v3047_v44, %v2067_v60  ;;  %vm2190_vm11 = vcmask 7168  }
 0x1f5   : > { %2097 = vadd.xlane.f32.xlu2 %v2096_v63  ;;  %v2057_v30 = vsel %vm2056_vm0, %v3045_v32, %v2053_v61 }
 0x1f6   : > { %v2062_v18 = vsel %vm2059_vm2, %v2061_v14, %v2057_v30  ;;  %v2072_v1 = vsel %vm2071_vm3, %v3047_v44, %v2068_v17 }
 0x1f7   : > { %v2063_v2 = vmul.f32 %v2062_v18, %v1901_v0  ;;  %v2077_v7 = vsel %vm2074_vm4, %v2076_v3, %v2072_v1 }
 0x1f8   : > { %v2078_v9 = vmul.f32 %v2077_v7, %v1902_v4 }
 0x1f9   : > { %v2085_v6 = vmul.f32 %v2063_v2, %v3492_v22 }
 0x1fa   : > { %v2086_v10 = vmul.f32 %v2078_v9, %v3492_v22 }
 0x1fb   : > { %v2105_v8 = vsel %vm1830_vm1, %v2085_v6, 0.0 }
 0x1fc   : > { %2106 = vadd.xlane.f32.xlu0 %v2105_v8  ;;  %v2108_v11 = vsel %vm1830_vm1, %v2086_v10, 0.0  ;;  %vm2169_vm1 = vcmask 1041409  }
 0x1fd   : > { %2103 = vadd.xlane.f32.xlu2 %v2102_v33 }
 0x205   : > { %2109 = vadd.xlane.f32.xlu2 %v2108_v11 }
 0x207   : > { %v2116_v13 = vpop.xlane.xlu2 %2115 }
 0x208   : > { %v2119_v26 = vperm.slane %v2116_v13, 1  ;;  %v2118_v27 = vperm.slane %v2116_v13, 0  ;;  %v2120_v28 = vperm.slane %v2116_v13, 2  ;;  %v2121_v29 = vperm.slane %v2116_v13, 3 }
 0x209   : > { %v2122_v31 = vperm.slane %v2116_v13, 4  ;;  %v2124_v32 = vperm.slane %v2116_v13, 6  ;;  %v2123_v41 = vperm.slane %v2116_v13, 5  ;;  %v2125_v47 = vperm.slane %v2116_v13, 7 }
 0x20d   : > { %2149 = vperm.xlu1 %3028, %v3031_v12  }
 0x25f   : > { %v2092_v16 = vpop.xlane.xlu0 %2091 }
 0x260   : > { %v2089_v15 = vpop.xlane.xlu2 %2088  ;;  %v2135_v35 = vadd.f32 %v2119_v26, %v2092_v16 }
 0x261   : > { %v2134_v45 = vadd.f32 %v2118_v27, %v2089_v15 }
 0x267   : > { %v2101_v21 = vpop.xlane.xlu0 %2100  ;;  %v2095_v25 = vpop.xlane.xlu1 %2094 }
 0x268   : > { %v2098_v20 = vpop.xlane.xlu2 %2097  ;;  %v2136_v22 = vadd.f32 %v2120_v28, %v2095_v25  ;;  %v2138_v46 = vadd.f32 %v2122_v31, %v2101_v21 }
 0x269   : > { %v2137_v36 = vadd.f32 %v2121_v29, %v2098_v20 }
 0x26f   : > { %v2107_v40 = vpop.xlane.xlu0 %2106 }
 0x270   : > { %v2104_v24 = vpop.xlane.xlu2 %2103  ;;  %v2140_v51 = vadd.f32 %v2124_v32, %v2107_v40 }
 0x271   : > { %v2139_v48 = vadd.f32 %v2123_v41, %v2104_v24 }
 0x278   : > { %v2110_v44 = vpop.xlane.xlu2 %2109 }
 0x279   : > { %v2141_v52 = vadd.f32 %v2125_v47, %v2110_v44 }
 0x27f   : > { %v2150_v42 = vpop.permute.xlu1 %2149 }
 0x280   : > { %v2153_v43 = vadd.f32 %v2150_v42, %v2135_v35  ;;  %v2154_v49 = vadd.f32 %v2150_v42, %v2136_v22  ;;  %v2155_v50 = vadd.f32 %v2150_v42, %v2137_v36  ;;  %v2156_v53 = vadd.f32 %v2150_v42, %v2138_v46 }
 0x281   : > { %v2152_v54 = vadd.f32 %v2150_v42, %v2134_v45  ;;  %v2157_v55 = vadd.f32 %v2150_v42, %v2139_v48  ;;  %v2158_v19 = vadd.f32 %v2150_v42, %v2140_v51  ;;  %v2159_v23 = vadd.f32 %v2150_v42, %v2141_v52 }
 0x282   : > { %v2168_v56 = vrot.slane %v2153_v43, 7  ;;  %v2171_v57 = vrot.slane %v2154_v49, 6  ;;  %v2174_v37 = vrot.slane %v2155_v50, 5  ;;  %v2177_v59 = vrot.slane %v2156_v53, 4 }
 0x283   : > { %v2180_v39 = vrot.slane %v2157_v55, 3  ;;  %v2183_v62 = vrot.slane %v2158_v19, 2  ;;  %v2186_v0 = vrot.slane %v2159_v23, 1 }
 0x284   : > { %v2170_v38 = vsel %vm2169_vm1, %v2168_v56, %v2152_v54 }
 0x285   : > { %v2173_v58 = vsel %vm2172_vm5, %v2171_v57, %v2170_v38 }
 0x286   : > { %v2176_v60 = vsel %vm2175_vm6, %v2174_v37, %v2173_v58 }
 0x287   : > { %v2179_v61 = vsel %vm2178_vm7, %v2177_v59, %v2176_v60 }
 0x288   : > { %v2182_v63 = vsel %vm2181_vm8, %v2180_v39, %v2179_v61 }
 0x289   : > { %v2185_v14 = vsel %vm2184_vm9, %v2183_v62, %v2182_v63 }
 0x28a   : > { %v2188_v17 = vsel %vm2187_vm10, %v2186_v0, %v2185_v14 }
 0x28b   : > { %2191 = vst.msk [vmem:[%s3590_s6] sm:$0xff] %vm2190_vm11, %v2188_v17 }
 0x28c PF: > { %s21_s28 = sadd.s32 1, %s3098_s28   ;;  %s3601_s23 = smov %s3082_s24 }
 0x28d   : > { %p18_p0 = scmp.ge.s32.totalorder %s21_s28, 4   ;;  %s3602_s24 = smov %s3086_s25 }
 0x28e   : > { %s3603_s25 = smov %s3194_s10  ;;  %s3604_s26 = smov %s3094_s27 }
 0x28f   : > { %s3605_s27 = smov %s3607_s29  ;;  %20 = sbr.rel (!%p18_p0) target bundleno = 7 (0x7), region = 149 }
 0x294   :  { %2211 = vsyncpa [#allocation6], 1 }
 0x295   :  { %2213 = vsyncpa [#allocation6 + $0x1], 1 }

</bundles_post_ra>
